<compile_context>
chip_gen: v5e
topology: v5e:2x2
jax: 0.10.0
libtpu: 0.0.40
codegen_flags: <defaults>
</compile_context>

<pallas_src>
import math
import functools

import numpy as np
import jax
import jax.numpy as jnp
from jax import lax
from jax.experimental import pallas as pl
from jax.experimental.pallas import tpu as pltpu

# ----------------------------- hyper-parameters -----------------------------
TOKENS     = 20    # hp.Tokens
ENC_SIZE   = 32    # hp.Encoder.Size
CONV_K     = 5     # hp.Encoder.Conv.Kernel_Size
CONV_STACK = 2     # hp.Encoder.Conv.Stack
PE_PERIOD  = 12    # hp.Encoder.Transformer.Positional_Encoding_Period
HEADS      = 2     # hp.Encoder.Transformer.Head
FFN_K      = 3     # hp.Encoder.Transformer.FFN.Kernel_Size
TF_STACK   = 2     # hp.Encoder.Transformer.Stack
FEATURE    = 10    # hp.Sound.Mel_Dim (Feature_Type == 'Mel')
BN_EPS     = 1e-5
EMB_ROWS   = 32    # embedding table padded to a round number of rows

# TODO(synk): torch.nn.Dropout layers are identity here (inference forward).
# TODO(synk): a channels-first [D, B*T] layout would make outputs lane-dense
#             for large B*T; skipped at these tiny shapes.


# ------------------------------ kernel helpers -------------------------------
def _mish(x):
    # Guard-free softplus: exp overflow -> inf -> tanh(inf)=1 -> x (correct limit).
    return x * jnp.tanh(jnp.log1p(jnp.exp(x)))


# ------------------------------ the fused kernel ------------------------------
def _encoder_kernel(len_ref, alpha_ref, tok_ref, pe_ref, emb_ref,
                    conv_w_ref, conv_aff_ref,
                    qkv_w_ref, out_w_ref, ffn0_w_ref, ffn1_w_ref, vec_ref,
                    proj_w_ref, proj_b_ref,
                    x_out_ref, proj_out_ref, *, T):
    D, H, F = ENC_SIZE, HEADS, FEATURE
    dh = D // H
    f32, bf16 = jnp.float32, jnp.bfloat16

    b = pl.program_id(0)
    L = len_ref[b]                                   # sequence length (SMEM scalar)
    alpha = alpha_ref[0, 0]                          # PE alpha (SMEM scalar)

    # --- sequence mask (hoisted broadcasts) ----------------------------------
    row = lax.broadcasted_iota(jnp.int32, (T, 1), 0)
    mask = (row < L).astype(f32)                     # [T, 1]
    mask_d = jnp.broadcast_to(mask, (T, D))
    mask_4d = jnp.broadcast_to(mask, (T, 4 * D))

    # --- per-offset boundary masks for 'same' conv taps (zero padding) -------
    max_pad = max((CONV_K - 1) // 2, (FFN_K - 1) // 2)
    offs = [o for o in range(-max_pad, max_pad + 1) if o != 0]
    bmask = {o: ((row < T - o) if o > 0 else (row >= -o)).astype(f32) for o in offs}

    def conv_same(xm, k, w, b_row):
        """'same' Conv1d: taps via XLU rolls, lane-concatenated -> ONE matmul.

        xm: [T, Din] f32 (already masked). tap_off[t] = xm[t+off] (0 outside)
        = roll(xm, -off) * boundary_mask.  w: [k*Din, Dout] bf16, b_row [1, Dout].
        """
        pad = (k - 1) // 2
        taps = []
        for j in range(k):
            off = j - pad
            if off == 0:
                taps.append(xm)
            else:
                taps.append(pltpu.roll(xm, shift=(-off) % T, axis=0) * bmask[off])
        cat = jnp.concatenate(taps, axis=1).astype(bf16)           # [T, k*Din]
        return jnp.dot(cat, w, preferred_element_type=f32) + b_row

    # --- embedding: one-hot matmul (gather-free, bf16 MXU pass) --------------
    tok = tok_ref[0]                                                # [T, 1] int32
    onehot = (lax.broadcasted_iota(jnp.int32, (T, EMB_ROWS), 1) == tok).astype(bf16)
    x = jnp.dot(onehot, emb_ref[...], preferred_element_type=f32) * mask_d  # [T, D]

    # --- conv prenet: x = (BN(mish(conv(x*m))) + x) * m ----------------------
    for ci in range(CONV_STACK):
        aff = conv_aff_ref[ci]                                      # [3, D] f32
        y = conv_same(x, CONV_K, conv_w_ref[ci], aff[0:1, :])
        y = _mish(y) * aff[1:2, :] + aff[2:3, :]                    # folded BN affine
        x = (y + x) * mask_d

    # --- periodic positional encoding: x = (x + alpha * pe) * m --------------
    x = (x + alpha * pe_ref[...]) * mask_d

    # --- key-padding additive bias, shared by all blocks / heads -------------
    # NOTE: -1e30 (not -inf) so a fully padded sequence degrades to uniform
    # attention instead of NaN; its output is zeroed by `* mask` afterwards.
    col = lax.broadcasted_iota(jnp.int32, (1, T), 1)
    bias_tt = jnp.broadcast_to(jnp.where(col < L, 0.0, -1e30), (T, T))

    # --- FFT blocks -----------------------------------------------------------
    for bi in range(TF_STACK):
        vec = vec_ref[bi]                                           # [8, 4D] f32
        b_qkv = vec[0:1, :3 * D]
        b_out = vec[1:2, :D]
        a_sc, a_sh = vec[2:3, :D], vec[3:4, :D]
        b0 = vec[4:5, :]
        b1 = vec[5:6, :D]
        f_sc, f_sh = vec[6:7, :D], vec[7:8, :D]

        # fused QKV projection (1/sqrt(dh) already folded into the Q columns)
        xb = x.astype(bf16)
        qkv = jnp.dot(xb, qkv_w_ref[bi], preferred_element_type=f32) + b_qkv  # [T, 3D]

        ctx = []
        for h in range(H):
            q = qkv[:, h * dh:(h + 1) * dh].astype(bf16)
            k = qkv[:, D + h * dh:D + (h + 1) * dh].astype(bf16)
            v = qkv[:, 2 * D + h * dh:2 * D + (h + 1) * dh].astype(bf16)
            s = lax.dot_general(q, k, (((1,), (1,)), ((), ())),
                                preferred_element_type=f32) + bias_tt
            s = s - jnp.max(s, axis=-1, keepdims=True)
            p = jnp.exp(s)
            p = p * pl.reciprocal(jnp.sum(p, axis=-1, keepdims=True), approx=True)
            ctx.append(jnp.dot(p.astype(bf16), v, preferred_element_type=f32))
        ctx = jnp.concatenate(ctx, axis=1).astype(bf16)             # [T, D]
        attn = jnp.dot(ctx, out_w_ref[bi], preferred_element_type=f32) + b_out
        x = (attn + x) * mask_d                                     # residual
        x = (x * a_sc + a_sh) * mask_d                              # attention_norm

        # FFN: conv0 -> mish -> (mask) -> conv1, residual, ffn_norm, mask
        hdn = conv_same(x, FFN_K, ffn0_w_ref[bi], b0)               # [T, 4D]
        hdn = _mish(hdn) * mask_4d
        y = conv_same(hdn, FFN_K, ffn1_w_ref[bi], b1)
        x = (y + x) * mask_d
        x = (x * f_sc + f_sh) * mask_d                              # ffn_norm

    # --- projection head: Mish -> Conv1d(k=1) -> * mask ----------------------
    pr = jnp.dot(_mish(x).astype(bf16), proj_w_ref[...],
                 preferred_element_type=f32) + proj_b_ref[...]
    proj_out_ref[0] = pr * jnp.broadcast_to(mask, (T, 2 * F))
    x_out_ref[0] = x


# --------------------------- trace-time constants -----------------------------
def _pe_table_np(period, d):
    pos = np.arange(period, dtype=np.float32)[:, None]
    div = np.exp(np.arange(0, d, 2, dtype=np.float32) * (-math.log(10000.0) / d))
    pe = np.zeros((period, d), np.float32)
    pe[:, 0::2] = np.sin(pos * div)
    pe[:, 1::2] = np.cos(pos * div)
    return pe


def _pe_rows_np(T):
    pe = _pe_table_np(PE_PERIOD, ENC_SIZE)
    reps = -(-T // PE_PERIOD)
    return np.tile(pe, (reps, 1))[:T]


# ------------------------------ parameter packing ------------------------------
def init_params(key):
    ks = iter(jax.random.split(key, 128))
    nrm = lambda shape, s=0.05: s * jax.random.normal(next(ks), shape, jnp.float32)
    def bn(dim):
        return dict(gamma=1.0 + 0.1 * jax.random.normal(next(ks), (dim,), jnp.float32),
                    beta=nrm((dim,)),
                    mean=nrm((dim,)),
                    var=1.0 + 0.1 * jnp.abs(jax.random.normal(next(ks), (dim,), jnp.float32)))
    D = ENC_SIZE
    return dict(
        embedding=nrm((TOKENS, D), 0.1),
        convs=[dict(w=nrm((D, D, CONV_K)), b=nrm((D,)), bn=bn(D))
               for _ in range(CONV_STACK)],
        pe_alpha=jnp.float32(1.0),
        blocks=[dict(
            in_proj_w=nrm((3 * D, D)), in_proj_b=nrm((3 * D,)),
            out_proj_w=nrm((D, D)),    out_proj_b=nrm((D,)),
            attn_bn=bn(D),
            ffn_w0=nrm((4 * D, D, FFN_K)), ffn_b0=nrm((4 * D,)),
            ffn_w1=nrm((D, 4 * D, FFN_K)), ffn_b1=nrm((D,)),
            ffn_bn=bn(D),
        ) for _ in range(TF_STACK)],
        proj_w=nrm((2 * FEATURE, D, 1)), proj_b=nrm((2 * FEATURE,)),
    )


def pack_params(params):
    """One-time repacking (outside jit): BN folded to affine, conv weights
    pre-concatenated per tap, QKV fused (with 1/sqrt(dh) folded into Q),
    small per-layer vectors consolidated into one slab, bf16 MXU weights."""
    D, H, F = ENC_SIZE, HEADS, FEATURE
    dh = D // H
    f32, bf16 = jnp.float32, jnp.bfloat16

    def bn_affine(p):
        scale = p["gamma"] / jnp.sqrt(p["var"] + BN_EPS)
        shift = p["beta"] - p["mean"] * scale
        return scale.astype(f32), shift.astype(f32)

    def pad_row(v, width):
        return jnp.zeros((width,), f32).at[:v.shape[0]].set(v.astype(f32))

    emb = (jnp.zeros((EMB_ROWS, D), f32)
           .at[:TOKENS].set(params["embedding"])).astype(bf16)

    conv_w, conv_aff = [], []
    for cp in params["convs"]:
        scale, shift = bn_affine(cp["bn"])
        w = jnp.transpose(cp["w"], (2, 1, 0)).reshape(CONV_K * D, D)   # [K*Din, Dout]
        conv_w.append(w.astype(bf16))
        conv_aff.append(jnp.stack([cp["b"].astype(f32), scale, shift], axis=0))  # [3, D]

    qkv_w, out_w, ffn0_w, ffn1_w, blk_vec = [], [], [], [], []
    q_scale = 1.0 / math.sqrt(dh)
    for bp in params["blocks"]:
        ipw, ipb = bp["in_proj_w"], bp["in_proj_b"]                    # [3D, D], [3D]
        wq, bq = ipw[:D] * q_scale, ipb[:D] * q_scale                  # fold 1/sqrt(dh)
        wk, bk = ipw[D:2 * D], ipb[D:2 * D]
        wv, bv = ipw[2 * D:], ipb[2 * D:]
        qkv_w.append(jnp.concatenate([wq.T, wk.T, wv.T], axis=1).astype(bf16))  # [D, 3D]
        out_w.append(bp["out_proj_w"].T.astype(bf16))                           # [D, D]
        ffn0_w.append(jnp.transpose(bp["ffn_w0"], (2, 1, 0))
                      .reshape(FFN_K * D, 4 * D).astype(bf16))
        ffn1_w.append(jnp.transpose(bp["ffn_w1"], (2, 1, 0))
                      .reshape(FFN_K * 4 * D, D).astype(bf16))
        a_scale, a_shift = bn_affine(bp["attn_bn"])
        f_scale, f_shift = bn_affine(bp["ffn_bn"])
        blk_vec.append(jnp.stack([
            pad_row(jnp.concatenate([bq, bk, bv]), 4 * D),   # row 0: fused QKV bias
            pad_row(bp["out_proj_b"], 4 * D),                # row 1: out-proj bias
            pad_row(a_scale, 4 * D),                         # row 2: attn BN scale
            pad_row(a_shift, 4 * D),                         # row 3: attn BN shift
            bp["ffn_b0"].astype(f32),                        # row 4: FFN conv0 bias
            pad_row(bp["ffn_b1"], 4 * D),                    # row 5: FFN conv1 bias
            pad_row(f_scale, 4 * D),                         # row 6: FFN BN scale
            pad_row(f_shift, 4 * D),                         # row 7: FFN BN shift
        ], axis=0))                                          # [8, 4D]

    return dict(
        emb=emb,
        alpha=jnp.asarray(params["pe_alpha"], f32).reshape(1, 1),
        conv_w=jnp.stack(conv_w, 0), conv_aff=jnp.stack(conv_aff, 0),
        qkv_w=jnp.stack(qkv_w, 0), out_w=jnp.stack(out_w, 0),
        ffn0_w=jnp.stack(ffn0_w, 0), ffn1_w=jnp.stack(ffn1_w, 0),
        blk_vec=jnp.stack(blk_vec, 0),
        proj_w=jnp.transpose(params["proj_w"], (2, 1, 0)).reshape(D, 2 * F).astype(bf16),
        proj_b=params["proj_b"].reshape(1, 2 * F).astype(f32))


# -------------------------------- Encoder forward ------------------------------
@jax.jit
def encoder_forward(packed, tokens, lengths):
    B, T = tokens.shape
    D, F = ENC_SIZE, FEATURE

    pe = jnp.asarray(_pe_rows_np(T), jnp.float32)           # [T, D] constant
    tok3 = tokens.astype(jnp.int32).reshape(B, T, 1)

    vmem = pltpu.MemorySpace.VMEM
    smem = pltpu.MemorySpace.SMEM
    full_vmem = pl.BlockSpec(memory_space=vmem)

    x_btd, proj_btf = pl.pallas_call(
        functools.partial(_encoder_kernel, T=T),
        out_shape=(jax.ShapeDtypeStruct((B, T, D), jnp.float32),
                   jax.ShapeDtypeStruct((B, T, 2 * F), jnp.float32)),
        grid=(B,),
        in_specs=[
            pl.BlockSpec(memory_space=smem),                 # lengths  [B]
            pl.BlockSpec(memory_space=smem),                 # alpha    [1,1]
            pl.BlockSpec((1, T, 1), lambda b: (b, 0, 0)),    # tokens   [B,T,1]
            full_vmem,                                       # pe       [T,D]
            full_vmem,                                       # emb      [E,D]
            full_vmem, full_vmem,                            # conv_w, conv_aff
            full_vmem, full_vmem, full_vmem, full_vmem,      # qkv_w, out_w, ffn0_w, ffn1_w
            full_vmem,                                       # blk_vec
            full_vmem, full_vmem,                            # proj_w, proj_b
        ],
        out_specs=(pl.BlockSpec((1, T, D), lambda b: (b, 0, 0)),
                   pl.BlockSpec((1, T, 2 * F), lambda b: (b, 0, 0))),
        compiler_params=pltpu.CompilerParams(
            dimension_semantics=("parallel",)),              # v7x: shard batch over 2 TCs
    )(lengths.astype(jnp.int32), packed["alpha"], tok3, pe, packed["emb"],
      packed["conv_w"], packed["conv_aff"],
      packed["qkv_w"], packed["out_w"], packed["ffn0_w"], packed["ffn1_w"],
      packed["blk_vec"], packed["proj_w"], packed["proj_b"])

    # back to PyTorch [B, C, T] layouts
    x_out = x_btd.transpose(0, 2, 1)                         # [B, D, T]
    proj = proj_btf.transpose(0, 2, 1)                       # [B, 2F, T]
    means, log_stds = proj[:, :F, :], proj[:, F:, :]
    valid = jnp.arange(T, dtype=jnp.int32)[None, :] < lengths[:, None]
    masks = valid.astype(jnp.float32)[:, None, :]
    return x_out, means, log_stds, masks


# ------------------------------------ main -------------------------------------
if __name__ == "__main__":
    key = jax.random.PRNGKey(0)
    k_par, k_tok = jax.random.split(key)
    params = init_params(k_par)
    packed = pack_params(params)     # one-time weight repacking (outside jit)

    B, T = 2, 16
    tokens = jax.random.randint(k_tok, (B, T), 0, TOKENS, dtype=jnp.int32)
    lengths = jnp.array([16, 11], dtype=jnp.int32)

    x_out, means, log_stds, masks = encoder_forward(packed, tokens, lengths)
    jax.block_until_ready((x_out, means, log_stds, masks))

    assert x_out.shape == (B, ENC_SIZE, T)
    assert means.shape == (B, FEATURE, T)
    assert log_stds.shape == (B, FEATURE, T)
    assert masks.shape == (B, 1, T)
    print("KERNEL_OK")
</pallas_src>

<mosaic_0001>
module attributes {stable_mosaic.version = 11 : i64} {
  func.func @_encoder_kernel(%arg0: i32, %arg1: memref<2xi32, #tpu.memory_space<smem>>, %arg2: memref<1x1xf32, #tpu.memory_space<smem>>, %arg3: memref<1x16x1xi32, #tpu.memory_space<vmem>>, %arg4: memref<16x32xf32, #tpu.memory_space<vmem>>, %arg5: memref<32x32xbf16, #tpu.memory_space<vmem>>, %arg6: memref<2x160x32xbf16, #tpu.memory_space<vmem>>, %arg7: memref<2x3x32xf32, #tpu.memory_space<vmem>>, %arg8: memref<2x32x96xbf16, #tpu.memory_space<vmem>>, %arg9: memref<2x32x32xbf16, #tpu.memory_space<vmem>>, %arg10: memref<2x96x128xbf16, #tpu.memory_space<vmem>>, %arg11: memref<2x384x32xbf16, #tpu.memory_space<vmem>>, %arg12: memref<2x8x128xf32, #tpu.memory_space<vmem>>, %arg13: memref<32x20xbf16, #tpu.memory_space<vmem>>, %arg14: memref<1x20xf32, #tpu.memory_space<vmem>>, %arg15: memref<1x16x32xf32, #tpu.memory_space<vmem>>, %arg16: memref<1x16x20xf32, #tpu.memory_space<vmem>>) attributes {dimension_semantics = [#tpu.dimension_semantics<parallel>], iteration_bounds = array<i64: 2>, scalar_prefetch = 0 : i64, scratch_operands = 0 : i64, tpu.core_type = #tpu.core_type<tc>, window_params = [{transform_indices = @transform_0, window_bounds = array<i64: 2>}, {transform_indices = @transform_1, window_bounds = array<i64: 1, 1>}, {transform_indices = @transform_2, window_bounds = array<i64: 1, 16, 1>}, {pipeline_mode = #tpu.pipeline_mode<synchronous>, transform_indices = @transform_3, window_bounds = array<i64: 16, 32>}, {pipeline_mode = #tpu.pipeline_mode<synchronous>, transform_indices = @transform_4, window_bounds = array<i64: 32, 32>}, {pipeline_mode = #tpu.pipeline_mode<synchronous>, transform_indices = @transform_5, window_bounds = array<i64: 2, 160, 32>}, {pipeline_mode = #tpu.pipeline_mode<synchronous>, transform_indices = @transform_6, window_bounds = array<i64: 2, 3, 32>}, {pipeline_mode = #tpu.pipeline_mode<synchronous>, transform_indices = @transform_7, window_bounds = array<i64: 2, 32, 96>}, {pipeline_mode = #tpu.pipeline_mode<synchronous>, transform_indices = @transform_8, window_bounds = array<i64: 2, 32, 32>}, {pipeline_mode = #tpu.pipeline_mode<synchronous>, transform_indices = @transform_9, window_bounds = array<i64: 2, 96, 128>}, {pipeline_mode = #tpu.pipeline_mode<synchronous>, transform_indices = @transform_10, window_bounds = array<i64: 2, 384, 32>}, {pipeline_mode = #tpu.pipeline_mode<synchronous>, transform_indices = @transform_11, window_bounds = array<i64: 2, 8, 128>}, {pipeline_mode = #tpu.pipeline_mode<synchronous>, transform_indices = @transform_12, window_bounds = array<i64: 32, 20>}, {pipeline_mode = #tpu.pipeline_mode<synchronous>, transform_indices = @transform_13, window_bounds = array<i64: 1, 20>}, {transform_indices = @transform_14, window_bounds = array<i64: 1, 16, 32>}, {transform_indices = @transform_15, window_bounds = array<i64: 1, 16, 20>}]} {
    %0 = arith.index_cast %arg0 : i32 to index
    %1 = memref.load %arg1[%0] : memref<2xi32, #tpu.memory_space<smem>>
    %c0 = arith.constant 0 : index
    %c0_0 = arith.constant 0 : index
    %2 = memref.load %arg2[%c0, %c0_0] : memref<1x1xf32, #tpu.memory_space<smem>>
    %3 = tpu.iota {dimensions = array<i32: 0>} : vector<16x1xi32>
    %4 = vector.broadcast %1 : i32 to vector<16x1xi32>
    %5 = arith.cmpi slt, %3, %4 : vector<16x1xi32>
    %6 = arith.extui %5 : vector<16x1xi1> to vector<16x1xi32>
    %7 = arith.sitofp %6 : vector<16x1xi32> to vector<16x1xf32>
    %8 = vector.shape_cast %7 : vector<16x1xf32> to vector<16x1xf32>
    %9 = vector.broadcast %8 : vector<16x1xf32> to vector<16x32xf32>
    %10 = vector.shape_cast %7 : vector<16x1xf32> to vector<16x1xf32>
    %11 = vector.broadcast %10 : vector<16x1xf32> to vector<16x128xf32>
    %c2_i32 = arith.constant 2 : i32
    %12 = vector.broadcast %c2_i32 : i32 to vector<16x1xi32>
    %13 = arith.cmpi sge, %3, %12 : vector<16x1xi32>
    %14 = arith.extui %13 : vector<16x1xi1> to vector<16x1xi32>
    %15 = arith.sitofp %14 : vector<16x1xi32> to vector<16x1xf32>
    %c1_i32 = arith.constant 1 : i32
    %16 = vector.broadcast %c1_i32 : i32 to vector<16x1xi32>
    %17 = arith.cmpi sge, %3, %16 : vector<16x1xi32>
    %18 = arith.extui %17 : vector<16x1xi1> to vector<16x1xi32>
    %19 = arith.sitofp %18 : vector<16x1xi32> to vector<16x1xf32>
    %c15_i32 = arith.constant 15 : i32
    %20 = vector.broadcast %c15_i32 : i32 to vector<16x1xi32>
    %21 = arith.cmpi slt, %3, %20 : vector<16x1xi32>
    %22 = arith.extui %21 : vector<16x1xi1> to vector<16x1xi32>
    %23 = arith.sitofp %22 : vector<16x1xi32> to vector<16x1xf32>
    %c14_i32 = arith.constant 14 : i32
    %24 = vector.broadcast %c14_i32 : i32 to vector<16x1xi32>
    %25 = arith.cmpi slt, %3, %24 : vector<16x1xi32>
    %26 = arith.extui %25 : vector<16x1xi1> to vector<16x1xi32>
    %27 = arith.sitofp %26 : vector<16x1xi32> to vector<16x1xf32>
    %c0_1 = arith.constant 0 : index
    %c0_2 = arith.constant 0 : index
    %c0_3 = arith.constant 0 : index
    %28 = vector.load %arg3[%c0_1, %c0_2, %c0_3] : memref<1x16x1xi32, #tpu.memory_space<vmem>>, vector<1x16x1xi32>
    %29 = vector.shape_cast %28 : vector<1x16x1xi32> to vector<16x1xi32>
    %30 = tpu.iota {dimensions = array<i32: 1>} : vector<16x32xi32>
    %31 = vector.broadcast %29 : vector<16x1xi32> to vector<16x32xi32>
    %32 = arith.cmpi eq, %30, %31 : vector<16x32xi32>
    %33 = arith.extui %32 : vector<16x32xi1> to vector<16x32xi32>
    %34 = arith.sitofp %33 : vector<16x32xi32> to vector<16x32xf32>
    %35 = arith.truncf %34 : vector<16x32xf32> to vector<16x32xbf16>
    %c0_4 = arith.constant 0 : index
    %c0_5 = arith.constant 0 : index
    %36 = vector.load %arg5[%c0_4, %c0_5] : memref<32x32xbf16, #tpu.memory_space<vmem>>, vector<32x32xbf16>
    %cst = arith.constant dense<0.000000e+00> : vector<16x32xf32>
    %37 = tpu.matmul %35, %36, %cst {dimension_numbers = #tpu.dot_dimension_numbers<[1], [0], [0], [1], [0, 0, 1, 1], [], []>} : vector<16x32xbf16>, vector<32x32xbf16>, vector<16x32xf32> -> vector<16x32xf32>
    %38 = arith.mulf %37, %9 : vector<16x32xf32>
    %c0_6 = arith.constant 0 : index
    %c0_7 = arith.constant 0 : index
    %c0_8 = arith.constant 0 : index
    %39 = vector.load %arg7[%c0_6, %c0_7, %c0_8] : memref<2x3x32xf32, #tpu.memory_space<vmem>>, vector<1x3x32xf32>
    %40 = vector.shape_cast %39 : vector<1x3x32xf32> to vector<3x32xf32>
    %c0_9 = arith.constant 0 : index
    %c0_10 = arith.constant 0 : index
    %c0_11 = arith.constant 0 : index
    %41 = vector.load %arg6[%c0_9, %c0_10, %c0_11] : memref<2x160x32xbf16, #tpu.memory_space<vmem>>, vector<1x160x32xbf16>
    %42 = vector.shape_cast %41 : vector<1x160x32xbf16> to vector<160x32xbf16>
    %43 = vector.extract_strided_slice %40 {offsets = [0, 0], sizes = [1, 32], strides = [1, 1]} : vector<3x32xf32> to vector<1x32xf32>
    %c2_i32_12 = arith.constant 2 : i32
    %44 = tpu.dynamic_rotate %38 by %c2_i32_12 dim 0 : vector<16x32xf32>, i32 -> vector<16x32xf32>
    %45 = vector.broadcast %15 : vector<16x1xf32> to vector<16x32xf32>
    %46 = arith.mulf %44, %45 : vector<16x32xf32>
    %c1_i32_13 = arith.constant 1 : i32
    %47 = tpu.dynamic_rotate %38 by %c1_i32_13 dim 0 : vector<16x32xf32>, i32 -> vector<16x32xf32>
    %48 = vector.broadcast %19 : vector<16x1xf32> to vector<16x32xf32>
    %49 = arith.mulf %47, %48 : vector<16x32xf32>
    %c15_i32_14 = arith.constant 15 : i32
    %50 = tpu.dynamic_rotate %38 by %c15_i32_14 dim 0 : vector<16x32xf32>, i32 -> vector<16x32xf32>
    %51 = vector.broadcast %23 : vector<16x1xf32> to vector<16x32xf32>
    %52 = arith.mulf %50, %51 : vector<16x32xf32>
    %c14_i32_15 = arith.constant 14 : i32
    %53 = tpu.dynamic_rotate %38 by %c14_i32_15 dim 0 : vector<16x32xf32>, i32 -> vector<16x32xf32>
    %54 = vector.broadcast %27 : vector<16x1xf32> to vector<16x32xf32>
    %55 = arith.mulf %53, %54 : vector<16x32xf32>
    %56 = tpu.concatenate %46, %49, %38, %52, %55 in 1 : vector<16x32xf32>, vector<16x32xf32>, vector<16x32xf32>, vector<16x32xf32>, vector<16x32xf32> -> vector<16x160xf32>
    %57 = arith.truncf %56 : vector<16x160xf32> to vector<16x160xbf16>
    %cst_16 = arith.constant dense<0.000000e+00> : vector<16x32xf32>
    %58 = tpu.matmul %57, %42, %cst_16 {dimension_numbers = #tpu.dot_dimension_numbers<[1], [0], [0], [1], [0, 0, 1, 1], [], []>} : vector<16x160xbf16>, vector<160x32xbf16>, vector<16x32xf32> -> vector<16x32xf32>
    %59 = vector.broadcast %43 : vector<1x32xf32> to vector<16x32xf32>
    %60 = arith.addf %58, %59 : vector<16x32xf32>
    %61 = math.exp %60 : vector<16x32xf32>
    %62 = math.log1p %61 : vector<16x32xf32>
    %63 = math.tanh %62 : vector<16x32xf32>
    %64 = arith.mulf %60, %63 : vector<16x32xf32>
    %65 = vector.extract_strided_slice %40 {offsets = [1, 0], sizes = [1, 32], strides = [1, 1]} : vector<3x32xf32> to vector<1x32xf32>
    %66 = vector.broadcast %65 : vector<1x32xf32> to vector<16x32xf32>
    %67 = arith.mulf %64, %66 : vector<16x32xf32>
    %68 = vector.extract_strided_slice %40 {offsets = [2, 0], sizes = [1, 32], strides = [1, 1]} : vector<3x32xf32> to vector<1x32xf32>
    %69 = vector.broadcast %68 : vector<1x32xf32> to vector<16x32xf32>
    %70 = arith.addf %67, %69 : vector<16x32xf32>
    %71 = arith.addf %70, %38 : vector<16x32xf32>
    %72 = arith.mulf %71, %9 : vector<16x32xf32>
    %c1 = arith.constant 1 : index
    %c0_17 = arith.constant 0 : index
    %c0_18 = arith.constant 0 : index
    %73 = vector.load %arg7[%c1, %c0_17, %c0_18] : memref<2x3x32xf32, #tpu.memory_space<vmem>>, vector<1x3x32xf32>
    %74 = vector.shape_cast %73 : vector<1x3x32xf32> to vector<3x32xf32>
    %c1_19 = arith.constant 1 : index
    %c0_20 = arith.constant 0 : index
    %c0_21 = arith.constant 0 : index
    %75 = vector.load %arg6[%c1_19, %c0_20, %c0_21] : memref<2x160x32xbf16, #tpu.memory_space<vmem>>, vector<1x160x32xbf16>
    %76 = vector.shape_cast %75 : vector<1x160x32xbf16> to vector<160x32xbf16>
    %77 = vector.extract_strided_slice %74 {offsets = [0, 0], sizes = [1, 32], strides = [1, 1]} : vector<3x32xf32> to vector<1x32xf32>
    %c2_i32_22 = arith.constant 2 : i32
    %78 = tpu.dynamic_rotate %72 by %c2_i32_22 dim 0 : vector<16x32xf32>, i32 -> vector<16x32xf32>
    %79 = vector.broadcast %15 : vector<16x1xf32> to vector<16x32xf32>
    %80 = arith.mulf %78, %79 : vector<16x32xf32>
    %c1_i32_23 = arith.constant 1 : i32
    %81 = tpu.dynamic_rotate %72 by %c1_i32_23 dim 0 : vector<16x32xf32>, i32 -> vector<16x32xf32>
    %82 = vector.broadcast %19 : vector<16x1xf32> to vector<16x32xf32>
    %83 = arith.mulf %81, %82 : vector<16x32xf32>
    %c15_i32_24 = arith.constant 15 : i32
    %84 = tpu.dynamic_rotate %72 by %c15_i32_24 dim 0 : vector<16x32xf32>, i32 -> vector<16x32xf32>
    %85 = vector.broadcast %23 : vector<16x1xf32> to vector<16x32xf32>
    %86 = arith.mulf %84, %85 : vector<16x32xf32>
    %c14_i32_25 = arith.constant 14 : i32
    %87 = tpu.dynamic_rotate %72 by %c14_i32_25 dim 0 : vector<16x32xf32>, i32 -> vector<16x32xf32>
    %88 = vector.broadcast %27 : vector<16x1xf32> to vector<16x32xf32>
    %89 = arith.mulf %87, %88 : vector<16x32xf32>
    %90 = tpu.concatenate %80, %83, %72, %86, %89 in 1 : vector<16x32xf32>, vector<16x32xf32>, vector<16x32xf32>, vector<16x32xf32>, vector<16x32xf32> -> vector<16x160xf32>
    %91 = arith.truncf %90 : vector<16x160xf32> to vector<16x160xbf16>
    %cst_26 = arith.constant dense<0.000000e+00> : vector<16x32xf32>
    %92 = tpu.matmul %91, %76, %cst_26 {dimension_numbers = #tpu.dot_dimension_numbers<[1], [0], [0], [1], [0, 0, 1, 1], [], []>} : vector<16x160xbf16>, vector<160x32xbf16>, vector<16x32xf32> -> vector<16x32xf32>
    %93 = vector.broadcast %77 : vector<1x32xf32> to vector<16x32xf32>
    %94 = arith.addf %92, %93 : vector<16x32xf32>
    %95 = math.exp %94 : vector<16x32xf32>
    %96 = math.log1p %95 : vector<16x32xf32>
    %97 = math.tanh %96 : vector<16x32xf32>
    %98 = arith.mulf %94, %97 : vector<16x32xf32>
    %99 = vector.extract_strided_slice %74 {offsets = [1, 0], sizes = [1, 32], strides = [1, 1]} : vector<3x32xf32> to vector<1x32xf32>
    %100 = vector.broadcast %99 : vector<1x32xf32> to vector<16x32xf32>
    %101 = arith.mulf %98, %100 : vector<16x32xf32>
    %102 = vector.extract_strided_slice %74 {offsets = [2, 0], sizes = [1, 32], strides = [1, 1]} : vector<3x32xf32> to vector<1x32xf32>
    %103 = vector.broadcast %102 : vector<1x32xf32> to vector<16x32xf32>
    %104 = arith.addf %101, %103 : vector<16x32xf32>
    %105 = arith.addf %104, %72 : vector<16x32xf32>
    %106 = arith.mulf %105, %9 : vector<16x32xf32>
    %c0_27 = arith.constant 0 : index
    %c0_28 = arith.constant 0 : index
    %107 = vector.load %arg4[%c0_27, %c0_28] : memref<16x32xf32, #tpu.memory_space<vmem>>, vector<16x32xf32>
    %108 = vector.broadcast %2 : f32 to vector<16x32xf32>
    %109 = arith.mulf %108, %107 : vector<16x32xf32>
    %110 = arith.addf %106, %109 : vector<16x32xf32>
    %111 = arith.mulf %110, %9 : vector<16x32xf32>
    %112 = tpu.iota {dimensions = array<i32: 1>} : vector<1x16xi32>
    %113 = vector.broadcast %1 : i32 to vector<1x16xi32>
    %114 = arith.cmpi slt, %112, %113 : vector<1x16xi32>
    %cst_29 = arith.constant 0.000000e+00 : f32
    %cst_30 = arith.constant -1.000000e+30 : f32
    %115 = vector.broadcast %cst_29 : f32 to vector<1x16xf32>
    %116 = vector.broadcast %cst_30 : f32 to vector<1x16xf32>
    %117 = arith.select %114, %115, %116 : vector<1x16xi1>, vector<1x16xf32>
    %118 = vector.shape_cast %117 : vector<1x16xf32> to vector<1x16xf32>
    %119 = vector.broadcast %118 : vector<1x16xf32> to vector<16x16xf32>
    %c0_31 = arith.constant 0 : index
    %c0_32 = arith.constant 0 : index
    %c0_33 = arith.constant 0 : index
    %120 = vector.load %arg12[%c0_31, %c0_32, %c0_33] : memref<2x8x128xf32, #tpu.memory_space<vmem>>, vector<1x8x128xf32>
    %121 = vector.shape_cast %120 : vector<1x8x128xf32> to vector<8x128xf32>
    %122 = vector.extract_strided_slice %121 {offsets = [0, 0], sizes = [1, 96], strides = [1, 1]} : vector<8x128xf32> to vector<1x96xf32>
    %123 = vector.extract_strided_slice %121 {offsets = [1, 0], sizes = [1, 32], strides = [1, 1]} : vector<8x128xf32> to vector<1x32xf32>
    %124 = vector.extract_strided_slice %121 {offsets = [2, 0], sizes = [1, 32], strides = [1, 1]} : vector<8x128xf32> to vector<1x32xf32>
    %125 = vector.extract_strided_slice %121 {offsets = [3, 0], sizes = [1, 32], strides = [1, 1]} : vector<8x128xf32> to vector<1x32xf32>
    %126 = vector.extract_strided_slice %121 {offsets = [4, 0], sizes = [1, 128], strides = [1, 1]} : vector<8x128xf32> to vector<1x128xf32>
    %127 = vector.extract_strided_slice %121 {offsets = [5, 0], sizes = [1, 32], strides = [1, 1]} : vector<8x128xf32> to vector<1x32xf32>
    %128 = vector.extract_strided_slice %121 {offsets = [6, 0], sizes = [1, 32], strides = [1, 1]} : vector<8x128xf32> to vector<1x32xf32>
    %129 = vector.extract_strided_slice %121 {offsets = [7, 0], sizes = [1, 32], strides = [1, 1]} : vector<8x128xf32> to vector<1x32xf32>
    %130 = arith.truncf %111 : vector<16x32xf32> to vector<16x32xbf16>
    %c0_34 = arith.constant 0 : index
    %c0_35 = arith.constant 0 : index
    %c0_36 = arith.constant 0 : index
    %131 = vector.load %arg8[%c0_34, %c0_35, %c0_36] : memref<2x32x96xbf16, #tpu.memory_space<vmem>>, vector<1x32x96xbf16>
    %132 = vector.shape_cast %131 : vector<1x32x96xbf16> to vector<32x96xbf16>
    %cst_37 = arith.constant dense<0.000000e+00> : vector<16x96xf32>
    %133 = tpu.matmul %130, %132, %cst_37 {dimension_numbers = #tpu.dot_dimension_numbers<[1], [0], [0], [1], [0, 0, 1, 1], [], []>} : vector<16x32xbf16>, vector<32x96xbf16>, vector<16x96xf32> -> vector<16x96xf32>
    %134 = vector.broadcast %122 : vector<1x96xf32> to vector<16x96xf32>
    %135 = arith.addf %133, %134 : vector<16x96xf32>
    %136 = vector.extract_strided_slice %135 {offsets = [0, 0], sizes = [16, 16], strides = [1, 1]} : vector<16x96xf32> to vector<16x16xf32>
    %137 = arith.truncf %136 : vector<16x16xf32> to vector<16x16xbf16>
    %138 = vector.extract_strided_slice %135 {offsets = [0, 32], sizes = [16, 16], strides = [1, 1]} : vector<16x96xf32> to vector<16x16xf32>
    %139 = arith.truncf %138 : vector<16x16xf32> to vector<16x16xbf16>
    %140 = vector.extract_strided_slice %135 {offsets = [0, 64], sizes = [16, 16], strides = [1, 1]} : vector<16x96xf32> to vector<16x16xf32>
    %141 = arith.truncf %140 : vector<16x16xf32> to vector<16x16xbf16>
    %cst_38 = arith.constant dense<0.000000e+00> : vector<16x16xf32>
    %142 = tpu.matmul %137, %139, %cst_38 {dimension_numbers = #tpu.dot_dimension_numbers<[1], [1], [0], [0], [0, 0, 1, 0], [], []>} : vector<16x16xbf16>, vector<16x16xbf16>, vector<16x16xf32> -> vector<16x16xf32>
    %143 = arith.addf %142, %119 : vector<16x16xf32>
    %cst_39 = arith.constant dense<0xFF800000> : vector<16xf32>
    %144 = vector.multi_reduction <maximumf>, %143, %cst_39 [1] : vector<16x16xf32> to vector<16xf32>
    %145 = vector.shape_cast %144 : vector<16xf32> to vector<16x1xf32>
    %146 = vector.broadcast %145 : vector<16x1xf32> to vector<16x16xf32>
    %147 = arith.subf %143, %146 : vector<16x16xf32>
    %148 = math.exp %147 : vector<16x16xf32>
    %cst_40 = arith.constant dense<0.000000e+00> : vector<16xf32>
    %149 = vector.multi_reduction <add>, %148, %cst_40 [1] : vector<16x16xf32> to vector<16xf32>
    %150 = vector.shape_cast %149 : vector<16xf32> to vector<16x1xf32>
    %151 = tpu.reciprocal %150 {approx = true} : vector<16x1xf32> -> vector<16x1xf32>
    %152 = vector.broadcast %151 : vector<16x1xf32> to vector<16x16xf32>
    %153 = arith.mulf %148, %152 : vector<16x16xf32>
    %154 = arith.truncf %153 : vector<16x16xf32> to vector<16x16xbf16>
    %cst_41 = arith.constant dense<0.000000e+00> : vector<16x16xf32>
    %155 = tpu.matmul %154, %141, %cst_41 {dimension_numbers = #tpu.dot_dimension_numbers<[1], [0], [0], [1], [0, 0, 1, 1], [], []>} : vector<16x16xbf16>, vector<16x16xbf16>, vector<16x16xf32> -> vector<16x16xf32>
    %156 = vector.extract_strided_slice %135 {offsets = [0, 16], sizes = [16, 16], strides = [1, 1]} : vector<16x96xf32> to vector<16x16xf32>
    %157 = arith.truncf %156 : vector<16x16xf32> to vector<16x16xbf16>
    %158 = vector.extract_strided_slice %135 {offsets = [0, 48], sizes = [16, 16], strides = [1, 1]} : vector<16x96xf32> to vector<16x16xf32>
    %159 = arith.truncf %158 : vector<16x16xf32> to vector<16x16xbf16>
    %160 = vector.extract_strided_slice %135 {offsets = [0, 80], sizes = [16, 16], strides = [1, 1]} : vector<16x96xf32> to vector<16x16xf32>
    %161 = arith.truncf %160 : vector<16x16xf32> to vector<16x16xbf16>
    %cst_42 = arith.constant dense<0.000000e+00> : vector<16x16xf32>
    %162 = tpu.matmul %157, %159, %cst_42 {dimension_numbers = #tpu.dot_dimension_numbers<[1], [1], [0], [0], [0, 0, 1, 0], [], []>} : vector<16x16xbf16>, vector<16x16xbf16>, vector<16x16xf32> -> vector<16x16xf32>
    %163 = arith.addf %162, %119 : vector<16x16xf32>
    %cst_43 = arith.constant dense<0xFF800000> : vector<16xf32>
    %164 = vector.multi_reduction <maximumf>, %163, %cst_43 [1] : vector<16x16xf32> to vector<16xf32>
    %165 = vector.shape_cast %164 : vector<16xf32> to vector<16x1xf32>
    %166 = vector.broadcast %165 : vector<16x1xf32> to vector<16x16xf32>
    %167 = arith.subf %163, %166 : vector<16x16xf32>
    %168 = math.exp %167 : vector<16x16xf32>
    %cst_44 = arith.constant dense<0.000000e+00> : vector<16xf32>
    %169 = vector.multi_reduction <add>, %168, %cst_44 [1] : vector<16x16xf32> to vector<16xf32>
    %170 = vector.shape_cast %169 : vector<16xf32> to vector<16x1xf32>
    %171 = tpu.reciprocal %170 {approx = true} : vector<16x1xf32> -> vector<16x1xf32>
    %172 = vector.broadcast %171 : vector<16x1xf32> to vector<16x16xf32>
    %173 = arith.mulf %168, %172 : vector<16x16xf32>
    %174 = arith.truncf %173 : vector<16x16xf32> to vector<16x16xbf16>
    %cst_45 = arith.constant dense<0.000000e+00> : vector<16x16xf32>
    %175 = tpu.matmul %174, %161, %cst_45 {dimension_numbers = #tpu.dot_dimension_numbers<[1], [0], [0], [1], [0, 0, 1, 1], [], []>} : vector<16x16xbf16>, vector<16x16xbf16>, vector<16x16xf32> -> vector<16x16xf32>
    %176 = tpu.concatenate %155, %175 in 1 : vector<16x16xf32>, vector<16x16xf32> -> vector<16x32xf32>
    %177 = arith.truncf %176 : vector<16x32xf32> to vector<16x32xbf16>
    %c0_46 = arith.constant 0 : index
    %c0_47 = arith.constant 0 : index
    %c0_48 = arith.constant 0 : index
    %178 = vector.load %arg9[%c0_46, %c0_47, %c0_48] : memref<2x32x32xbf16, #tpu.memory_space<vmem>>, vector<1x32x32xbf16>
    %179 = vector.shape_cast %178 : vector<1x32x32xbf16> to vector<32x32xbf16>
    %cst_49 = arith.constant dense<0.000000e+00> : vector<16x32xf32>
    %180 = tpu.matmul %177, %179, %cst_49 {dimension_numbers = #tpu.dot_dimension_numbers<[1], [0], [0], [1], [0, 0, 1, 1], [], []>} : vector<16x32xbf16>, vector<32x32xbf16>, vector<16x32xf32> -> vector<16x32xf32>
    %181 = vector.broadcast %123 : vector<1x32xf32> to vector<16x32xf32>
    %182 = arith.addf %180, %181 : vector<16x32xf32>
    %183 = arith.addf %182, %111 : vector<16x32xf32>
    %184 = arith.mulf %183, %9 : vector<16x32xf32>
    %185 = vector.broadcast %124 : vector<1x32xf32> to vector<16x32xf32>
    %186 = arith.mulf %184, %185 : vector<16x32xf32>
    %187 = vector.broadcast %125 : vector<1x32xf32> to vector<16x32xf32>
    %188 = arith.addf %186, %187 : vector<16x32xf32>
    %189 = arith.mulf %188, %9 : vector<16x32xf32>
    %c0_50 = arith.constant 0 : index
    %c0_51 = arith.constant 0 : index
    %c0_52 = arith.constant 0 : index
    %190 = vector.load %arg10[%c0_50, %c0_51, %c0_52] : memref<2x96x128xbf16, #tpu.memory_space<vmem>>, vector<1x96x128xbf16>
    %191 = vector.shape_cast %190 : vector<1x96x128xbf16> to vector<96x128xbf16>
    %c1_i32_53 = arith.constant 1 : i32
    %192 = tpu.dynamic_rotate %189 by %c1_i32_53 dim 0 : vector<16x32xf32>, i32 -> vector<16x32xf32>
    %193 = vector.broadcast %19 : vector<16x1xf32> to vector<16x32xf32>
    %194 = arith.mulf %192, %193 : vector<16x32xf32>
    %c15_i32_54 = arith.constant 15 : i32
    %195 = tpu.dynamic_rotate %189 by %c15_i32_54 dim 0 : vector<16x32xf32>, i32 -> vector<16x32xf32>
    %196 = vector.broadcast %23 : vector<16x1xf32> to vector<16x32xf32>
    %197 = arith.mulf %195, %196 : vector<16x32xf32>
    %198 = tpu.concatenate %194, %189, %197 in 1 : vector<16x32xf32>, vector<16x32xf32>, vector<16x32xf32> -> vector<16x96xf32>
    %199 = arith.truncf %198 : vector<16x96xf32> to vector<16x96xbf16>
    %cst_55 = arith.constant dense<0.000000e+00> : vector<16x128xf32>
    %200 = tpu.matmul %199, %191, %cst_55 {dimension_numbers = #tpu.dot_dimension_numbers<[1], [0], [0], [1], [0, 0, 1, 1], [], []>} : vector<16x96xbf16>, vector<96x128xbf16>, vector<16x128xf32> -> vector<16x128xf32>
    %201 = vector.broadcast %126 : vector<1x128xf32> to vector<16x128xf32>
    %202 = arith.addf %200, %201 : vector<16x128xf32>
    %203 = math.exp %202 : vector<16x128xf32>
    %204 = math.log1p %203 : vector<16x128xf32>
    %205 = math.tanh %204 : vector<16x128xf32>
    %206 = arith.mulf %202, %205 : vector<16x128xf32>
    %207 = arith.mulf %206, %11 : vector<16x128xf32>
    %c0_56 = arith.constant 0 : index
    %c0_57 = arith.constant 0 : index
    %c0_58 = arith.constant 0 : index
    %208 = vector.load %arg11[%c0_56, %c0_57, %c0_58] : memref<2x384x32xbf16, #tpu.memory_space<vmem>>, vector<1x384x32xbf16>
    %209 = vector.shape_cast %208 : vector<1x384x32xbf16> to vector<384x32xbf16>
    %c1_i32_59 = arith.constant 1 : i32
    %210 = tpu.dynamic_rotate %207 by %c1_i32_59 dim 0 : vector<16x128xf32>, i32 -> vector<16x128xf32>
    %211 = vector.broadcast %19 : vector<16x1xf32> to vector<16x128xf32>
    %212 = arith.mulf %210, %211 : vector<16x128xf32>
    %c15_i32_60 = arith.constant 15 : i32
    %213 = tpu.dynamic_rotate %207 by %c15_i32_60 dim 0 : vector<16x128xf32>, i32 -> vector<16x128xf32>
    %214 = vector.broadcast %23 : vector<16x1xf32> to vector<16x128xf32>
    %215 = arith.mulf %213, %214 : vector<16x128xf32>
    %216 = tpu.concatenate %212, %207, %215 in 1 : vector<16x128xf32>, vector<16x128xf32>, vector<16x128xf32> -> vector<16x384xf32>
    %217 = arith.truncf %216 : vector<16x384xf32> to vector<16x384xbf16>
    %cst_61 = arith.constant dense<0.000000e+00> : vector<16x32xf32>
    %218 = tpu.matmul %217, %209, %cst_61 {dimension_numbers = #tpu.dot_dimension_numbers<[1], [0], [0], [1], [0, 0, 1, 1], [], []>} : vector<16x384xbf16>, vector<384x32xbf16>, vector<16x32xf32> -> vector<16x32xf32>
    %219 = vector.broadcast %127 : vector<1x32xf32> to vector<16x32xf32>
    %220 = arith.addf %218, %219 : vector<16x32xf32>
    %221 = arith.addf %220, %189 : vector<16x32xf32>
    %222 = arith.mulf %221, %9 : vector<16x32xf32>
    %223 = vector.broadcast %128 : vector<1x32xf32> to vector<16x32xf32>
    %224 = arith.mulf %222, %223 : vector<16x32xf32>
    %225 = vector.broadcast %129 : vector<1x32xf32> to vector<16x32xf32>
    %226 = arith.addf %224, %225 : vector<16x32xf32>
    %227 = arith.mulf %226, %9 : vector<16x32xf32>
    %c1_62 = arith.constant 1 : index
    %c0_63 = arith.constant 0 : index
    %c0_64 = arith.constant 0 : index
    %228 = vector.load %arg12[%c1_62, %c0_63, %c0_64] : memref<2x8x128xf32, #tpu.memory_space<vmem>>, vector<1x8x128xf32>
    %229 = vector.shape_cast %228 : vector<1x8x128xf32> to vector<8x128xf32>
    %230 = vector.extract_strided_slice %229 {offsets = [0, 0], sizes = [1, 96], strides = [1, 1]} : vector<8x128xf32> to vector<1x96xf32>
    %231 = vector.extract_strided_slice %229 {offsets = [1, 0], sizes = [1, 32], strides = [1, 1]} : vector<8x128xf32> to vector<1x32xf32>
    %232 = vector.extract_strided_slice %229 {offsets = [2, 0], sizes = [1, 32], strides = [1, 1]} : vector<8x128xf32> to vector<1x32xf32>
    %233 = vector.extract_strided_slice %229 {offsets = [3, 0], sizes = [1, 32], strides = [1, 1]} : vector<8x128xf32> to vector<1x32xf32>
    %234 = vector.extract_strided_slice %229 {offsets = [4, 0], sizes = [1, 128], strides = [1, 1]} : vector<8x128xf32> to vector<1x128xf32>
    %235 = vector.extract_strided_slice %229 {offsets = [5, 0], sizes = [1, 32], strides = [1, 1]} : vector<8x128xf32> to vector<1x32xf32>
    %236 = vector.extract_strided_slice %229 {offsets = [6, 0], sizes = [1, 32], strides = [1, 1]} : vector<8x128xf32> to vector<1x32xf32>
    %237 = vector.extract_strided_slice %229 {offsets = [7, 0], sizes = [1, 32], strides = [1, 1]} : vector<8x128xf32> to vector<1x32xf32>
    %238 = arith.truncf %227 : vector<16x32xf32> to vector<16x32xbf16>
    %c1_65 = arith.constant 1 : index
    %c0_66 = arith.constant 0 : index
    %c0_67 = arith.constant 0 : index
    %239 = vector.load %arg8[%c1_65, %c0_66, %c0_67] : memref<2x32x96xbf16, #tpu.memory_space<vmem>>, vector<1x32x96xbf16>
    %240 = vector.shape_cast %239 : vector<1x32x96xbf16> to vector<32x96xbf16>
    %cst_68 = arith.constant dense<0.000000e+00> : vector<16x96xf32>
    %241 = tpu.matmul %238, %240, %cst_68 {dimension_numbers = #tpu.dot_dimension_numbers<[1], [0], [0], [1], [0, 0, 1, 1], [], []>} : vector<16x32xbf16>, vector<32x96xbf16>, vector<16x96xf32> -> vector<16x96xf32>
    %242 = vector.broadcast %230 : vector<1x96xf32> to vector<16x96xf32>
    %243 = arith.addf %241, %242 : vector<16x96xf32>
    %244 = vector.extract_strided_slice %243 {offsets = [0, 0], sizes = [16, 16], strides = [1, 1]} : vector<16x96xf32> to vector<16x16xf32>
    %245 = arith.truncf %244 : vector<16x16xf32> to vector<16x16xbf16>
    %246 = vector.extract_strided_slice %243 {offsets = [0, 32], sizes = [16, 16], strides = [1, 1]} : vector<16x96xf32> to vector<16x16xf32>
    %247 = arith.truncf %246 : vector<16x16xf32> to vector<16x16xbf16>
    %248 = vector.extract_strided_slice %243 {offsets = [0, 64], sizes = [16, 16], strides = [1, 1]} : vector<16x96xf32> to vector<16x16xf32>
    %249 = arith.truncf %248 : vector<16x16xf32> to vector<16x16xbf16>
    %cst_69 = arith.constant dense<0.000000e+00> : vector<16x16xf32>
    %250 = tpu.matmul %245, %247, %cst_69 {dimension_numbers = #tpu.dot_dimension_numbers<[1], [1], [0], [0], [0, 0, 1, 0], [], []>} : vector<16x16xbf16>, vector<16x16xbf16>, vector<16x16xf32> -> vector<16x16xf32>
    %251 = arith.addf %250, %119 : vector<16x16xf32>
    %cst_70 = arith.constant dense<0xFF800000> : vector<16xf32>
    %252 = vector.multi_reduction <maximumf>, %251, %cst_70 [1] : vector<16x16xf32> to vector<16xf32>
    %253 = vector.shape_cast %252 : vector<16xf32> to vector<16x1xf32>
    %254 = vector.broadcast %253 : vector<16x1xf32> to vector<16x16xf32>
    %255 = arith.subf %251, %254 : vector<16x16xf32>
    %256 = math.exp %255 : vector<16x16xf32>
    %cst_71 = arith.constant dense<0.000000e+00> : vector<16xf32>
    %257 = vector.multi_reduction <add>, %256, %cst_71 [1] : vector<16x16xf32> to vector<16xf32>
    %258 = vector.shape_cast %257 : vector<16xf32> to vector<16x1xf32>
    %259 = tpu.reciprocal %258 {approx = true} : vector<16x1xf32> -> vector<16x1xf32>
    %260 = vector.broadcast %259 : vector<16x1xf32> to vector<16x16xf32>
    %261 = arith.mulf %256, %260 : vector<16x16xf32>
    %262 = arith.truncf %261 : vector<16x16xf32> to vector<16x16xbf16>
    %cst_72 = arith.constant dense<0.000000e+00> : vector<16x16xf32>
    %263 = tpu.matmul %262, %249, %cst_72 {dimension_numbers = #tpu.dot_dimension_numbers<[1], [0], [0], [1], [0, 0, 1, 1], [], []>} : vector<16x16xbf16>, vector<16x16xbf16>, vector<16x16xf32> -> vector<16x16xf32>
    %264 = vector.extract_strided_slice %243 {offsets = [0, 16], sizes = [16, 16], strides = [1, 1]} : vector<16x96xf32> to vector<16x16xf32>
    %265 = arith.truncf %264 : vector<16x16xf32> to vector<16x16xbf16>
    %266 = vector.extract_strided_slice %243 {offsets = [0, 48], sizes = [16, 16], strides = [1, 1]} : vector<16x96xf32> to vector<16x16xf32>
    %267 = arith.truncf %266 : vector<16x16xf32> to vector<16x16xbf16>
    %268 = vector.extract_strided_slice %243 {offsets = [0, 80], sizes = [16, 16], strides = [1, 1]} : vector<16x96xf32> to vector<16x16xf32>
    %269 = arith.truncf %268 : vector<16x16xf32> to vector<16x16xbf16>
    %cst_73 = arith.constant dense<0.000000e+00> : vector<16x16xf32>
    %270 = tpu.matmul %265, %267, %cst_73 {dimension_numbers = #tpu.dot_dimension_numbers<[1], [1], [0], [0], [0, 0, 1, 0], [], []>} : vector<16x16xbf16>, vector<16x16xbf16>, vector<16x16xf32> -> vector<16x16xf32>
    %271 = arith.addf %270, %119 : vector<16x16xf32>
    %cst_74 = arith.constant dense<0xFF800000> : vector<16xf32>
    %272 = vector.multi_reduction <maximumf>, %271, %cst_74 [1] : vector<16x16xf32> to vector<16xf32>
    %273 = vector.shape_cast %272 : vector<16xf32> to vector<16x1xf32>
    %274 = vector.broadcast %273 : vector<16x1xf32> to vector<16x16xf32>
    %275 = arith.subf %271, %274 : vector<16x16xf32>
    %276 = math.exp %275 : vector<16x16xf32>
    %cst_75 = arith.constant dense<0.000000e+00> : vector<16xf32>
    %277 = vector.multi_reduction <add>, %276, %cst_75 [1] : vector<16x16xf32> to vector<16xf32>
    %278 = vector.shape_cast %277 : vector<16xf32> to vector<16x1xf32>
    %279 = tpu.reciprocal %278 {approx = true} : vector<16x1xf32> -> vector<16x1xf32>
    %280 = vector.broadcast %279 : vector<16x1xf32> to vector<16x16xf32>
    %281 = arith.mulf %276, %280 : vector<16x16xf32>
    %282 = arith.truncf %281 : vector<16x16xf32> to vector<16x16xbf16>
    %cst_76 = arith.constant dense<0.000000e+00> : vector<16x16xf32>
    %283 = tpu.matmul %282, %269, %cst_76 {dimension_numbers = #tpu.dot_dimension_numbers<[1], [0], [0], [1], [0, 0, 1, 1], [], []>} : vector<16x16xbf16>, vector<16x16xbf16>, vector<16x16xf32> -> vector<16x16xf32>
    %284 = tpu.concatenate %263, %283 in 1 : vector<16x16xf32>, vector<16x16xf32> -> vector<16x32xf32>
    %285 = arith.truncf %284 : vector<16x32xf32> to vector<16x32xbf16>
    %c1_77 = arith.constant 1 : index
    %c0_78 = arith.constant 0 : index
    %c0_79 = arith.constant 0 : index
    %286 = vector.load %arg9[%c1_77, %c0_78, %c0_79] : memref<2x32x32xbf16, #tpu.memory_space<vmem>>, vector<1x32x32xbf16>
    %287 = vector.shape_cast %286 : vector<1x32x32xbf16> to vector<32x32xbf16>
    %cst_80 = arith.constant dense<0.000000e+00> : vector<16x32xf32>
    %288 = tpu.matmul %285, %287, %cst_80 {dimension_numbers = #tpu.dot_dimension_numbers<[1], [0], [0], [1], [0, 0, 1, 1], [], []>} : vector<16x32xbf16>, vector<32x32xbf16>, vector<16x32xf32> -> vector<16x32xf32>
    %289 = vector.broadcast %231 : vector<1x32xf32> to vector<16x32xf32>
    %290 = arith.addf %288, %289 : vector<16x32xf32>
    %291 = arith.addf %290, %227 : vector<16x32xf32>
    %292 = arith.mulf %291, %9 : vector<16x32xf32>
    %293 = vector.broadcast %232 : vector<1x32xf32> to vector<16x32xf32>
    %294 = arith.mulf %292, %293 : vector<16x32xf32>
    %295 = vector.broadcast %233 : vector<1x32xf32> to vector<16x32xf32>
    %296 = arith.addf %294, %295 : vector<16x32xf32>
    %297 = arith.mulf %296, %9 : vector<16x32xf32>
    %c1_81 = arith.constant 1 : index
    %c0_82 = arith.constant 0 : index
    %c0_83 = arith.constant 0 : index
    %298 = vector.load %arg10[%c1_81, %c0_82, %c0_83] : memref<2x96x128xbf16, #tpu.memory_space<vmem>>, vector<1x96x128xbf16>
    %299 = vector.shape_cast %298 : vector<1x96x128xbf16> to vector<96x128xbf16>
    %c1_i32_84 = arith.constant 1 : i32
    %300 = tpu.dynamic_rotate %297 by %c1_i32_84 dim 0 : vector<16x32xf32>, i32 -> vector<16x32xf32>
    %301 = vector.broadcast %19 : vector<16x1xf32> to vector<16x32xf32>
    %302 = arith.mulf %300, %301 : vector<16x32xf32>
    %c15_i32_85 = arith.constant 15 : i32
    %303 = tpu.dynamic_rotate %297 by %c15_i32_85 dim 0 : vector<16x32xf32>, i32 -> vector<16x32xf32>
    %304 = vector.broadcast %23 : vector<16x1xf32> to vector<16x32xf32>
    %305 = arith.mulf %303, %304 : vector<16x32xf32>
    %306 = tpu.concatenate %302, %297, %305 in 1 : vector<16x32xf32>, vector<16x32xf32>, vector<16x32xf32> -> vector<16x96xf32>
    %307 = arith.truncf %306 : vector<16x96xf32> to vector<16x96xbf16>
    %cst_86 = arith.constant dense<0.000000e+00> : vector<16x128xf32>
    %308 = tpu.matmul %307, %299, %cst_86 {dimension_numbers = #tpu.dot_dimension_numbers<[1], [0], [0], [1], [0, 0, 1, 1], [], []>} : vector<16x96xbf16>, vector<96x128xbf16>, vector<16x128xf32> -> vector<16x128xf32>
    %309 = vector.broadcast %234 : vector<1x128xf32> to vector<16x128xf32>
    %310 = arith.addf %308, %309 : vector<16x128xf32>
    %311 = math.exp %310 : vector<16x128xf32>
    %312 = math.log1p %311 : vector<16x128xf32>
    %313 = math.tanh %312 : vector<16x128xf32>
    %314 = arith.mulf %310, %313 : vector<16x128xf32>
    %315 = arith.mulf %314, %11 : vector<16x128xf32>
    %c1_87 = arith.constant 1 : index
    %c0_88 = arith.constant 0 : index
    %c0_89 = arith.constant 0 : index
    %316 = vector.load %arg11[%c1_87, %c0_88, %c0_89] : memref<2x384x32xbf16, #tpu.memory_space<vmem>>, vector<1x384x32xbf16>
    %317 = vector.shape_cast %316 : vector<1x384x32xbf16> to vector<384x32xbf16>
    %c1_i32_90 = arith.constant 1 : i32
    %318 = tpu.dynamic_rotate %315 by %c1_i32_90 dim 0 : vector<16x128xf32>, i32 -> vector<16x128xf32>
    %319 = vector.broadcast %19 : vector<16x1xf32> to vector<16x128xf32>
    %320 = arith.mulf %318, %319 : vector<16x128xf32>
    %c15_i32_91 = arith.constant 15 : i32
    %321 = tpu.dynamic_rotate %315 by %c15_i32_91 dim 0 : vector<16x128xf32>, i32 -> vector<16x128xf32>
    %322 = vector.broadcast %23 : vector<16x1xf32> to vector<16x128xf32>
    %323 = arith.mulf %321, %322 : vector<16x128xf32>
    %324 = tpu.concatenate %320, %315, %323 in 1 : vector<16x128xf32>, vector<16x128xf32>, vector<16x128xf32> -> vector<16x384xf32>
    %325 = arith.truncf %324 : vector<16x384xf32> to vector<16x384xbf16>
    %cst_92 = arith.constant dense<0.000000e+00> : vector<16x32xf32>
    %326 = tpu.matmul %325, %317, %cst_92 {dimension_numbers = #tpu.dot_dimension_numbers<[1], [0], [0], [1], [0, 0, 1, 1], [], []>} : vector<16x384xbf16>, vector<384x32xbf16>, vector<16x32xf32> -> vector<16x32xf32>
    %327 = vector.broadcast %235 : vector<1x32xf32> to vector<16x32xf32>
    %328 = arith.addf %326, %327 : vector<16x32xf32>
    %329 = arith.addf %328, %297 : vector<16x32xf32>
    %330 = arith.mulf %329, %9 : vector<16x32xf32>
    %331 = vector.broadcast %236 : vector<1x32xf32> to vector<16x32xf32>
    %332 = arith.mulf %330, %331 : vector<16x32xf32>
    %333 = vector.broadcast %237 : vector<1x32xf32> to vector<16x32xf32>
    %334 = arith.addf %332, %333 : vector<16x32xf32>
    %335 = arith.mulf %334, %9 : vector<16x32xf32>
    %336 = math.exp %335 : vector<16x32xf32>
    %337 = math.log1p %336 : vector<16x32xf32>
    %338 = math.tanh %337 : vector<16x32xf32>
    %339 = arith.mulf %335, %338 : vector<16x32xf32>
    %340 = arith.truncf %339 : vector<16x32xf32> to vector<16x32xbf16>
    %c0_93 = arith.constant 0 : index
    %c0_94 = arith.constant 0 : index
    %341 = vector.load %arg13[%c0_93, %c0_94] : memref<32x20xbf16, #tpu.memory_space<vmem>>, vector<32x20xbf16>
    %cst_95 = arith.constant dense<0.000000e+00> : vector<16x20xf32>
    %342 = tpu.matmul %340, %341, %cst_95 {dimension_numbers = #tpu.dot_dimension_numbers<[1], [0], [0], [1], [0, 0, 1, 1], [], []>} : vector<16x32xbf16>, vector<32x20xbf16>, vector<16x20xf32> -> vector<16x20xf32>
    %c0_96 = arith.constant 0 : index
    %c0_97 = arith.constant 0 : index
    %343 = vector.load %arg14[%c0_96, %c0_97] : memref<1x20xf32, #tpu.memory_space<vmem>>, vector<1x20xf32>
    %344 = vector.broadcast %343 : vector<1x20xf32> to vector<16x20xf32>
    %345 = arith.addf %342, %344 : vector<16x20xf32>
    %346 = vector.shape_cast %7 : vector<16x1xf32> to vector<16x1xf32>
    %347 = vector.broadcast %346 : vector<16x1xf32> to vector<16x20xf32>
    %348 = arith.mulf %345, %347 : vector<16x20xf32>
    %c0_98 = arith.constant 0 : index
    %c0_99 = arith.constant 0 : index
    %c0_100 = arith.constant 0 : index
    %349 = vector.load %arg16[%c0_98, %c0_99, %c0_100] : memref<1x16x20xf32, #tpu.memory_space<vmem>>, vector<1x16x20xf32>
    %350 = vector.shape_cast %349 : vector<1x16x20xf32> to vector<16x20xf32>
    %351 = vector.shape_cast %348 : vector<16x20xf32> to vector<1x16x20xf32>
    tpu.vector_store %arg16[%c0_98, %c0_99, %c0_100], %351 {strides = array<i32>} : memref<1x16x20xf32, #tpu.memory_space<vmem>>, vector<1x16x20xf32>,
    %c0_101 = arith.constant 0 : index
    %c0_102 = arith.constant 0 : index
    %c0_103 = arith.constant 0 : index
    %352 = vector.load %arg15[%c0_101, %c0_102, %c0_103] : memref<1x16x32xf32, #tpu.memory_space<vmem>>, vector<1x16x32xf32>
    %353 = vector.shape_cast %352 : vector<1x16x32xf32> to vector<16x32xf32>
    %354 = vector.shape_cast %335 : vector<16x32xf32> to vector<1x16x32xf32>
    tpu.vector_store %arg15[%c0_101, %c0_102, %c0_103], %354 {strides = array<i32>} : memref<1x16x32xf32, #tpu.memory_space<vmem>>, vector<1x16x32xf32>,
    return
  }
  func.func @transform_0(%arg0: i32) -> i32 {
    %c0_i32 = arith.constant 0 : i32
    %c0_i32_0 = arith.constant 0 : i32
    return %c0_i32 : i32
  }
  func.func @transform_1(%arg0: i32) -> (i32, i32) {
    %c0_i32 = arith.constant 0 : i32
    %c0_i32_0 = arith.constant 0 : i32
    %c0_i32_1 = arith.constant 0 : i32
    return %c0_i32, %c0_i32_0 : i32, i32
  }
  func.func @transform_2(%arg0: i32) -> (i32, i32, i32) {
    %c0_i32 = arith.constant 0 : i32
    %c0_i32_0 = arith.constant 0 : i32
    %c0_i32_1 = arith.constant 0 : i32
    return %arg0, %c0_i32, %c0_i32_0 : i32, i32, i32
  }
  func.func @transform_3(%arg0: i32) -> (i32, i32) {
    %c0_i32 = arith.constant 0 : i32
    %c0_i32_0 = arith.constant 0 : i32
    %c0_i32_1 = arith.constant 0 : i32
    return %c0_i32, %c0_i32_0 : i32, i32
  }
  func.func @transform_4(%arg0: i32) -> (i32, i32) {
    %c0_i32 = arith.constant 0 : i32
    %c0_i32_0 = arith.constant 0 : i32
    %c0_i32_1 = arith.constant 0 : i32
    return %c0_i32, %c0_i32_0 : i32, i32
  }
  func.func @transform_5(%arg0: i32) -> (i32, i32, i32) {
    %c0_i32 = arith.constant 0 : i32
    %c0_i32_0 = arith.constant 0 : i32
    %c0_i32_1 = arith.constant 0 : i32
    %c0_i32_2 = arith.constant 0 : i32
    return %c0_i32, %c0_i32_0, %c0_i32_1 : i32, i32, i32
  }
  func.func @transform_6(%arg0: i32) -> (i32, i32, i32) {
    %c0_i32 = arith.constant 0 : i32
    %c0_i32_0 = arith.constant 0 : i32
    %c0_i32_1 = arith.constant 0 : i32
    %c0_i32_2 = arith.constant 0 : i32
    return %c0_i32, %c0_i32_0, %c0_i32_1 : i32, i32, i32
  }
  func.func @transform_7(%arg0: i32) -> (i32, i32, i32) {
    %c0_i32 = arith.constant 0 : i32
    %c0_i32_0 = arith.constant 0 : i32
    %c0_i32_1 = arith.constant 0 : i32
    %c0_i32_2 = arith.constant 0 : i32
    return %c0_i32, %c0_i32_0, %c0_i32_1 : i32, i32, i32
  }
  func.func @transform_8(%arg0: i32) -> (i32, i32, i32) {
    %c0_i32 = arith.constant 0 : i32
    %c0_i32_0 = arith.constant 0 : i32
    %c0_i32_1 = arith.constant 0 : i32
    %c0_i32_2 = arith.constant 0 : i32
    return %c0_i32, %c0_i32_0, %c0_i32_1 : i32, i32, i32
  }
  func.func @transform_9(%arg0: i32) -> (i32, i32, i32) {
    %c0_i32 = arith.constant 0 : i32
    %c0_i32_0 = arith.constant 0 : i32
    %c0_i32_1 = arith.constant 0 : i32
    %c0_i32_2 = arith.constant 0 : i32
    return %c0_i32, %c0_i32_0, %c0_i32_1 : i32, i32, i32
  }
  func.func @transform_10(%arg0: i32) -> (i32, i32, i32) {
    %c0_i32 = arith.constant 0 : i32
    %c0_i32_0 = arith.constant 0 : i32
    %c0_i32_1 = arith.constant 0 : i32
    %c0_i32_2 = arith.constant 0 : i32
    return %c0_i32, %c0_i32_0, %c0_i32_1 : i32, i32, i32
  }
  func.func @transform_11(%arg0: i32) -> (i32, i32, i32) {
    %c0_i32 = arith.constant 0 : i32
    %c0_i32_0 = arith.constant 0 : i32
    %c0_i32_1 = arith.constant 0 : i32
    %c0_i32_2 = arith.constant 0 : i32
    return %c0_i32, %c0_i32_0, %c0_i32_1 : i32, i32, i32
  }
  func.func @transform_12(%arg0: i32) -> (i32, i32) {
    %c0_i32 = arith.constant 0 : i32
    %c0_i32_0 = arith.constant 0 : i32
    %c0_i32_1 = arith.constant 0 : i32
    return %c0_i32, %c0_i32_0 : i32, i32
  }
  func.func @transform_13(%arg0: i32) -> (i32, i32) {
    %c0_i32 = arith.constant 0 : i32
    %c0_i32_0 = arith.constant 0 : i32
    %c0_i32_1 = arith.constant 0 : i32
    return %c0_i32, %c0_i32_0 : i32, i32
  }
  func.func @transform_14(%arg0: i32) -> (i32, i32, i32) {
    %c0_i32 = arith.constant 0 : i32
    %c0_i32_0 = arith.constant 0 : i32
    %c0_i32_1 = arith.constant 0 : i32
    return %arg0, %c0_i32, %c0_i32_0 : i32, i32, i32
  }
  func.func @transform_15(%arg0: i32) -> (i32, i32, i32) {
    %c0_i32 = arith.constant 0 : i32
    %c0_i32_0 = arith.constant 0 : i32
    %c0_i32_1 = arith.constant 0 : i32
    return %arg0, %c0_i32, %c0_i32_0 : i32, i32, i32
  }
}

</mosaic_0001>

<bundles_post_ra>
// kernel: encoder_forward.1
= control target key start
LH: loop header
LB: loop body
LE: loop exit
PB: predicated region body
PF: predicated region fallthrough
CT: control target
= control target key end

     0   :  { %s4214_s0 = inlined_call_operand.vmem [shape: s32[2], index: 0, kind: input, shape index: {}]   ;;  %s4215_s1 = inlined_call_operand.<no memory space> [shape: f32[1,1], index: 1, kind: input, shape index: {}]   ;;  %s4216_s2 = inlined_call_operand.vmem [shape: s32[2,16,1], index: 2, kind: input, shape index: {}]   ;;  %s4217_s3 = inlined_call_operand.vmem [shape: f32[16,32], index: 3, kind: input, shape index: {}]   ;;  %s4218_s4 = inlined_call_operand.vmem [shape: bf16[32,32], index: 4, kind: input, shape index: {}]   ;;  %s4219_s5 = inlined_call_operand.vmem [shape: bf16[2,160,32], index: 5, kind: input, shape index: {}]   ;;  %s4220_s6 = inlined_call_operand.vmem [shape: f32[2,3,32], index: 6, kind: input, shape index: {}]   ;;  %s4221_s7 = inlined_call_operand.vmem [shape: bf16[2,32,96], index: 7, kind: input, shape index: {}]   ;;  %s4222_s8 = inlined_call_operand.vmem [shape: bf16[2,32,32], index: 8, kind: input, shape index: {}]   ;;  %s4223_s9 = inlined_call_operand.vmem [shape: bf16[2,96,128], index: 9, kind: input, shape index: {}]   ;;  %s4224_s10 = inlined_call_operand.vmem [shape: bf16[2,384,32], index: 10, kind: input, shape index: {}]   ;;  %s4225_s11 = inlined_call_operand.vmem [shape: f32[2,8,128], index: 11, kind: input, shape index: {}]   ;;  %s4226_s12 = inlined_call_operand.vmem [shape: bf16[32,20], index: 12, kind: input, shape index: {}]   ;;  %s4227_s13 = inlined_call_operand.vmem [shape: f32[1,20], index: 13, kind: input, shape index: {}]   ;;  %s4228_s14 = inlined_call_operand.hbm [shape: f32[2,16,32], index: 14, kind: output, shape index: {0}]   ;;  %s4229_s15 = inlined_call_operand.vmem [shape: f32[2,16,20], index: 15, kind: output, shape index: {1}]  }
   0x1   :  { %4245 = sst [smem:[#allocation13_spill]] %s4214_s0 }
   0x2   :  { %4246 = sst [smem:[#allocation14_spill]] %s4216_s2 }
   0x3   :  { %4247 = sst [smem:[#allocation15_spill]] %s4217_s3 }
   0x4   :  { %4248 = sst [smem:[#allocation16_spill]] %s4218_s4 }
   0x5   :  { %21 = sst [smem:[#allocation2]] %s4215_s1 }
   0x6   :  { %22 = vsyncpa [#allocation5], 0 }
   0x7   :  { %23 = vsyncpa [#allocation4], 0 }
   0x8   :  { %25 = vsyncpa [#allocation4 + $0x1], 0  ;;  %s3462_s20 = smov 0   ;;  %s3464_s21 = smov 0  }
   0x9   :  { %s3466_s22 = smov 0   ;;  %s3468_s23 = smov 0  }
   0xa LB: > { %4249 = sst [smem:[#allocation9_spill]] %s3360_s22  ;;  %s3483_s1 = sadd.s32 4294967295, %s3364_s23   ;;  %s3364_s23 = sphi %s3468_s23, %s4268_s23   ;;  %s3360_s22 = sphi %s3466_s22, %s4273_s22   ;;  %s3356_s21 = sphi %s3464_s21, %s4272_s21   ;;  %s3352_s20 = sphi %s3462_s20, %s4271_s20  }
   0xb   : > { %s2472_s24 = sadd.s32 4294967294, %s3364_s23   ;;  %s3487_s25 = sadd.s32 1, %s3364_s23  }
   0xc   : > { %4250 = sst [smem:[#allocation10_spill]] %s3487_s25  ;;  %s337_s26 = sadd.s32 1, %s3360_s22 }
   0xd   : > { %s334_s27 = ssub.s32 %s3364_s23, %s3487_s25  ;;  %p347_p0 = scmp.ne.s32.totalorder %s3360_s22, %s3356_s21 }
   0xe   : > { %p335_p1 = scmp.eq.s32.totalorder %s334_s27, 0  ;;  %p348_p2 = scmp.eq.s32.totalorder %s3483_s1, 1 }
   0xf   : > { %p353_p3 = scmp.ne.s32.totalorder %s3356_s21, %s3352_s20  ;;  %p354_p4 = scmp.eq.s32.totalorder %s2472_s24, 1 }
  0x10   : > { %s3498_s28 = scalar_select %p335_p1, %s3360_s22, %s337_s26  }
  0x11   : > { %p3500_p5 = por %p348_p2, %p347_p0  ;;  %p3504_p6 = por %p354_p4, %p353_p3 }
  0x12   : > { %4251 = sst [smem:[#allocation11_spill]] %s3498_s28  ;;  %p2473_p7 = scmp.ge.s32.totalorder %s3364_s23, 1 }
  0x13   : > { %s4253_s30 = scalar_select %p3504_p6, 1, 0 }
  0x14   : > { %p387_p8 = scmp.lt.s32.totalorder %s3364_s23, 3  ;;  %p3081_p9 = scmp.eq.s32.totalorder %s3483_s1, 0 }
  0x15   : > { %4254 = sst [smem:[#allocation12_spill]] %s4253_s30  ;;  %s3366_s19 = smov [#allocation3]  }
  0x16   : > { %p388_p10 = pnand %p2473_p7, %p387_p8  ;;  %s4255_s0 = sld [smem:[#allocation13_spill]] }
  0x18   : > { %p3073_p11 = pneg %p388_p10 }
  0x19   : > { %456 = sbr.rel (%p388_p10) target bundleno = 4167 (0x1047), region = 76 }
  0x1a   : > { %p3074_p12 = pnand %p3081_p9, %p3073_p11 }
  0x1c   : > { %s399_s18 = sshll.u32 %s4255_s0, 4  ;;  %s400_s18 = int_to_ptr.vmem [resolvable:$true] %s399_s18 }
  0x1d   : > { %3076 = dma.vmem_to_smem (!%p3074_p12), %s400_s18, 16, %s3366_s19, [#allocation5]  }
  0x1e   : > { %3343 = dma.done.wait (%p3081_p9), [#allocation5], 16  }
  0x1f   : > { %3345 = vsyncadd (%p3081_p9), [#allocation5], 4294967280 }
  0x20   : > { %463 = sfence }
  0x21   : > { %p511_p13 = scmp.lt.s32.totalorder %s3483_s1, 1  ;;  %v3367_v0 = vmov 0   ;;  %s4256_s2 = sld [smem:[#allocation14_spill]]  ;;  %v524_v5 = vlaneseq  ;;  %v3368_v9 = vmov 0.0   ;;  %vm591_vm2 = vcmask 261120   ;;  %v2985_v13 = vld [vmem:[%s4219_s5 + $0x48] sm:$0xff] }
  0x22   : > { %3129 = vset.pattern.permute.xlu0 %v3367_v0  ;;  %s4257_s4 = sld [smem:[#allocation16_spill]]  ;;  %778 = vmatpush.bf16.msra.mxu2 %v2985_v13  ;;  %v2984_v14 = vld [vmem:[%s4219_s5 + $0x40] sm:$0xff]  ;;  %s4231_s18 = smov 96   ;;  %v2983_v46 = vld [vmem:[%s4219_s5 + $0x38] sm:$0xff]  ;;  %v2982_v47 = vld [vmem:[%s4219_s5 + $0x30] sm:$0xff]  ;;  %vm686_vm13 = vcmask 523264  }
  0x23   : > { %s3516_s24 = scalar_select %p511_p13, %s3483_s1, 1  ;;  %v3530_v7 = vand.u32 127, %v524_v5  ;;  %v3544_v15 = vshrl.u32 %v524_v5, 7  ;;  %758 = vmatpush.bf16.msra.mxu1 %v2983_v46  ;;  %v2981_v48 = vld [vmem:[%s4219_s5 + $0x28] sm:$0xff]  ;;  %v2980_v49 = vld [vmem:[%s4219_s5 + $0x20] sm:$0xff]  ;;  %v2979_v50 = vld [vmem:[%s4219_s5 + $0x18] sm:$0xff] }
  0x24   : > { %s4233_s19 = smov 32   ;;  %s4235_s0 = smov 64   ;;  %v2978_v51 = vld [vmem:[%s4219_s5 + $0x10] sm:$0xff]  ;;  %v2977_v52 = vld [vmem:[%s4219_s5 + $0x8] sm:$0xff]  ;;  %v2976_v53 = vld [vmem:[%s4219_s5] sm:$0xff]  ;;  %vm689_vm14 = vcmask 785408  }
  0x25   : > { %s4230_s26 = sshll.u32 %s3516_s24, 4  ;;  %v526_v17 = vadd.s32 8, %v3544_v15  ;;  %vm655_vm7 = vcmp.lt.s32.totalorder %v3544_v15, 6  ;;  %vm540_vm8 = vcmp.ge.s32.totalorder %v3544_v15, 1  ;;  %vm648_vm9 = vcmp.lt.s32.totalorder %v3544_v15, 7  ;;  %s4261_s3 = sld [smem:[#allocation15_spill]] }
  0x26   : > { %779 = vmatpush.bf16.msra.mxu2 %v2984_v14  ;;  %vm641_vm10 = vcmp.lt.s32.totalorder %v3544_v15, 1  ;;  %v3580_v31 = vsel %vm540_vm8, 1.0, %v3368_v9  ;;  %vm534_vm11 = vcmp.ge.s32.totalorder %v3544_v15, 2  ;;  %vm634_vm12 = vcmp.lt.s32.totalorder %v3544_v15, 2  ;;  %v611_v13 = vld [vmem:[%s4220_s6] sm:$0x7] }
  0x27   : > { %s515_s17 = scalar_lea.vmem %s4256_s2, %s4230_s26  ;;  %vm553_vm5 = vcmp.lt.s32.totalorder %v526_v17, 14  ;;  %vm547_vm6 = vcmp.lt.s32.totalorder %v526_v17, 15  ;;  %759 = vmatpush.bf16.msra.mxu1 %v2982_v47  ;;  %v3633_v57 = vsel %vm534_vm11, 1.0, %v3368_v9  ;;  %v694_v14 = vperm.slane %v611_v13, 0  ;;  %s4258_s26 = smov 64  }
  0x28   : > { %v558_v1 = vld [vmem:[%s515_s17] sm:$0xff]  ;;  %v559_v2 = vld [vmem:[%s515_s17 + $0x8] sm:$0xff]  ;;  %s522_s17 = sld [smem:[#allocation3 + %s3483_s1]]  ;;  %v3565_v24 = vsel %vm553_vm5, 1.0, %v3368_v9  ;;  %v3571_v26 = vsel %vm547_vm6, 1.0, %v3368_v9  ;;  %s4260_s2 = smov 32  }
  0x29   : > { %563 = vperm.xlu0 %3129, %v558_v1   ;;  %v2975_v3 = vld [vmem:[%s4257_s4 + $0x8] sm:$0xff]  ;;  %v2974_v4 = vld [vmem:[%s4257_s4] sm:$0xff]  ;;  %s523_s4 = sld [smem:[#allocation2]]  ;;  %s4244_s27 = smov 112  }
  0x2a   : > { %601 = vmatpush.bf16.msra.mxu0 %v2975_v3  ;;  %s4243_s16 = smov 80  }
  0x2b   : > { %760 = vmatpush.bf16.msra.mxu1 %v2981_v48 }
  0x2e   : > { %602 = vmatpush.bf16.msra.mxu0 %v2974_v4  ;;  %v3546_v16 = vstv %s522_s17  ;;  %s4242_s17 = smov 48  }
  0x2f   : > { %vm528_vm3 = vcmp.lt.s32.totalorder %v3544_v15, %v3546_v16  ;;  %vm529_vm4 = vcmp.lt.s32.totalorder %v526_v17, %v3546_v16  ;;  %761 = vmatpush.bf16.msra.mxu1 %v2980_v49  ;;  %v2993_v49 = vld [vmem:[%s4219_s5 + $0x88] sm:$0xff]  ;;  %vm1038_vm5 = vcmp.lt.s32.totalorder %v3530_v7, %v3546_v16 }
  0x30   : > { %v3553_v19 = vsel %vm528_vm3, 1.0, %v3368_v9  ;;  %v3556_v20 = vsel %vm529_vm4, 1.0, %v3368_v9  ;;  %965 = vmatpush.bf16.msra.mxu3 %v2993_v49  ;;  %vm1080_vm4 = vcmask 130048  }
  0x31   : > { %566 = vperm.xlu0 %3129, %v559_v2  }
  0x33   : > { %762 = vmatpush.bf16.msra.mxu1 %v2979_v50 }
  0x37   : > { %763 = vmatpush.bf16.msra.mxu1 %v2978_v51 }
  0x3b   : > { %764 = vmatpush.bf16.msra.mxu1 %v2977_v52  ;;  %v812_v52 = vperm.slane %v611_v13, 1 }
  0x3f   : > { %765 = vmatpush.bf16.msra.mxu1 %v2976_v53 }
  0x9b   : > { %v564_v6 = vpop.permute.xlu0 %563 }
  0x9c   : > { %vm568_vm0 = vcmp.eq.s32.totalorder %v3530_v7, %v564_v6 }
  0x9d   : > { %v2489_v10 = vsel %vm568_vm0, 1.0, %v3368_v9 }
  0xa3   : > { %v567_v8 = vpop.permute.xlu0 %566 }
  0xa4   : > { %vm569_vm1 = vcmp.eq.s32.totalorder %v3530_v7, %v567_v8 }
  0xa5   : > { %v2490_v11 = vsel %vm569_vm1, 1.0, %v3368_v9 }
  0xa6   : > { %v574_v12 = vpack.c.bf16 %v2490_v11, %v2489_v10 }
  0xa8   : > { %2499 = vmatmul.msk.bf16.vlgmr.msra.gmra.mxu0 %vm591_vm2, %v574_v12 }
 0x125   : > { %v604_v18 = vpop.f32.mrf.mxu0 }
 0x126   : > { %v3559_v21 = vmul.f32 %v3553_v19, %v604_v18 }
 0x128   : > { %v653_v25 = vrot.slane %v3559_v21, 2  ;;  %v646_v28 = vrot.slane %v3559_v21, 1  ;;  %v639_v32 = vrot.slane %v3559_v21, 7  ;;  %v632_v56 = vrot.slane %v3559_v21, 6 }
 0x12d   : > { %v606_v22 = vpop.f32.mrf.mxu0 }
 0x12e   : > { %v3562_v23 = vmul.f32 %v3556_v20, %v606_v22 }
 0x130   : > { %v654_v27 = vrot.slane %v3562_v23, 2  ;;  %v647_v29 = vrot.slane %v3562_v23, 1  ;;  %v640_v30 = vrot.slane %v3562_v23, 7  ;;  %v3135_v45 = vpack.i.bf16 %v3562_v23, %v3559_v21 }
 0x131   : > { %v633_v55 = vrot.slane %v3562_v23, 6 }
 0x132   : > { %v657_v33 = vsel %vm655_vm7, %v654_v27, %v653_v25  ;;  %v650_v34 = vsel %vm648_vm9, %v647_v29, %v646_v28  ;;  %v643_v37 = vsel %vm641_vm10, %v640_v30, %v639_v32  ;;  %v656_v38 = vsel %vm655_vm7, %v653_v25, %v654_v27 }
 0x133   : > { %v659_v35 = vmul.f32 %v3565_v24, %v657_v33  ;;  %v652_v36 = vmul.f32 %v3571_v26, %v650_v34  ;;  %v649_v39 = vsel %vm648_vm9, %v646_v28, %v647_v29  ;;  %v644_v40 = vmul.f32 %v3580_v31, %v643_v37  ;;  %v2995_v37 = vld [vmem:[%s4219_s5 + $0x98] sm:$0xff] }
 0x134   : > { %v642_v43 = vsel %vm641_vm10, %v639_v32, %v640_v30  ;;  %v636_v58 = vsel %vm634_vm12, %v633_v55, %v632_v56  ;;  %v635_v0 = vsel %vm634_vm12, %v632_v56, %v633_v55  ;;  %985 = vmatpush.bf16.msrb.mxu0 %v2995_v37  ;;  %v2987_v37 = vld [vmem:[%s4219_s5 + $0x58] sm:$0xff] }
 0x135   : > { %v693_v41 = vpack.c.bf16 %v659_v35, %v656_v38  ;;  %v3140_v42 = vpack.i.bf16 %v652_v36, %v649_v39  ;;  %v3130_v44 = vpack.i.bf16 %v642_v43, %v644_v40  ;;  %v637_v62 = vmul.f32 %v3633_v57, %v636_v58 }
 0x137   : > { %2540 = vmatmul.msk.bf16.vlgmr.msra.gmra.mxu2 %vm591_vm2, %v693_v41  ;;  %3141 = vrot.lane.b32.xlu2 %v3140_v42, %s4231_s18  ;;  %v2994_v41 = vld [vmem:[%s4219_s5 + $0x90] sm:$0xff]  ;;  %s4259_s18 = smov 96  }
 0x138   : > { %3131 = vrot.lane.b32.xlu1 %v3130_v44, %s4233_s19  ;;  %986 = vmatpush.bf16.msrb.mxu0 %v2994_v41  ;;  %s3066_s19 = sshll.u32 %s3483_s1, 4  ;;  %s3318_s1 = scalar_lea.hbm %s4228_s14, 32 }
 0x140   : > { %3136 = vrot.lane.b32.xlu1 %v3135_v45, %s4235_s0  ;;  %s4241_s0 = smov 16  }
 0x191   : > { %v3142_v61 = vpop.permute.xlu2 %3141 }
 0x192   : > { %v3144_v3 = vunpack.i.h.bf16 %v3142_v61  ;;  %v3143_v4 = vunpack.i.l.bf16 %v3142_v61 }
 0x1aa   : > { %v3132_v54 = vpop.permute.xlu1 %3131 }
 0x1ab   : > { %v3134_v59 = vunpack.i.h.bf16 %v3132_v54  ;;  %v3133_v60 = vunpack.i.l.bf16 %v3132_v54 }
 0x1ad   : > { %v684_v5 = vsel %vm591_vm2, %v637_v62, %v3133_v60  ;;  %v685_v6 = vsel %vm591_vm2, %v635_v0, %v3134_v59  ;;  %v815_v59 = vperm.slane %v611_v13, 2 }
 0x1b2   : > { %v3137_v63 = vpop.permute.xlu1 %3136 }
 0x1b3   : > { %v3139_v1 = vunpack.i.h.bf16 %v3137_v63  ;;  %v3138_v2 = vunpack.i.l.bf16 %v3137_v63 }
 0x1b5   : > { %v687_v8 = vsel %vm686_vm13, %v684_v5, %v3138_v2  ;;  %v688_v9 = vsel %vm686_vm13, %v685_v6, %v3139_v1 }
 0x1b6   : > { %v690_v10 = vsel %vm689_vm14, %v687_v8, %v3143_v4  ;;  %v691_v11 = vsel %vm689_vm14, %v688_v9, %v3144_v3 }
 0x1b7   : > { %v692_v12 = vpack.c.bf16 %v691_v11, %v690_v10 }
 0x1b9   : > { %766 = vmatmul.bf16.vlgmr.msra.gmra.mxu1 %v692_v12 }
 0x1ba   : > { %v781_v17 = vpop.f32.mrf.mxu2 }
 0x1c2   : > { %v783_v30 = vpop.f32.mrf.mxu2 }
 0x236   : > { %v767_v18 = vpop.f32.mrf.mxu1 }
 0x237   : > { %v768_v22 = vadd.f32 %v767_v18, %v694_v14 }
 0x239   : > { %v782_v25 = vadd.f32 %v781_v17, %v768_v22 }
 0x23b   : > { %v786_v27 = vmul.f32 1.442695, %v782_v25 }
 0x23d   : > { %3191 = vpow2.f32 %v786_v27 }
 0x23e   : > { %v769_v28 = vpop.f32.mrf.mxu1 }
 0x23f   : > { %v770_v29 = vadd.f32 %v769_v28, %v694_v14 }
 0x241   : > { %v784_v32 = vadd.f32 %v783_v30, %v770_v29 }
 0x243   : > { %v3192_v33 = vpop.eup %3191  ;;  %v788_v34 = vmul.f32 1.442695, %v784_v32 }
 0x244   : > { %v790_v35 = vadd.f32 1.0, %v3192_v33  ;;  %v793_v36 = vmul.f32 -0.5, %v3192_v33  ;;  %v796_v39 = vand.u32 2147483647, %v3192_v33 }
 0x245   : > { %3193 = vpow2.f32 %v788_v34  ;;  %v2990_v34 = vld [vmem:[%s4219_s5 + $0x70] sm:$0xff] }
 0x246   : > { %3195 = vlog2.f32 %v790_v35  ;;  %v794_v38 = vadd.f32 1.0, %v793_v36  ;;  %vm797_vm15 = vcmp.lt.f32.partialorder %v796_v39, 0.0004427343  ;;  %v2989_v35 = vld [vmem:[%s4219_s5 + $0x68] sm:$0xff]  ;;  %v2988_v36 = vld [vmem:[%s4219_s5 + $0x60] sm:$0xff] }
 0x248   : > { %v795_v45 = vmul.f32 %v3192_v33, %v794_v38  ;;  %v2991_v33 = vld [vmem:[%s4219_s5 + $0x78] sm:$0xff]  ;;  %v2986_v38 = vld [vmem:[%s4219_s5 + $0x50] sm:$0xff] }
 0x24b   : > { %v3194_v40 = vpop.eup %3193 }
 0x24c   : > { %v3196_v42 = vpop.eup %3195  ;;  %v799_v43 = vadd.f32 1.0, %v3194_v40  ;;  %v802_v46 = vmul.f32 -0.5, %v3194_v40  ;;  %v805_v50 = vand.u32 2147483647, %v3194_v40 }
 0x24d   : > { %v792_v44 = vmul.f32 0.6931472, %v3196_v42 }
 0x24e   : > { %3197 = vlog2.f32 %v799_v43  ;;  %v803_v48 = vadd.f32 1.0, %v802_v46  ;;  %vm806_vm0 = vcmp.lt.f32.partialorder %v805_v50, 0.0004427343 }
 0x24f   : > { %v798_v47 = vsel %vm797_vm15, %v795_v45, %v792_v44 }
 0x250   : > { %3199 = vtanh.f32 %v798_v47  ;;  %v804_v54 = vmul.f32 %v3194_v40, %v803_v48 }
 0x254   : > { %v3198_v51 = vpop.eup %3197 }
 0x255   : > { %v801_v53 = vmul.f32 0.6931472, %v3198_v51 }
 0x256   : > { %v3200_v55 = vpop.eup %3199 }
 0x257   : > { %v810_v56 = vmul.f32 %v3200_v55, %v782_v25  ;;  %v807_v58 = vsel %vm806_vm0, %v804_v54, %v801_v53 }
 0x258   : > { %3201 = vtanh.f32 %v807_v58 }
 0x259   : > { %v813_v60 = vmul.f32 %v812_v52, %v810_v56 }
 0x25b   : > { %v816_v61 = vadd.f32 %v815_v59, %v813_v60 }
 0x25d   : > { %v818_v0 = vadd.f32 %v816_v61, %v3559_v21 }
 0x25e   : > { %v3202_v62 = vpop.eup %3201 }
 0x25f   : > { %v811_v63 = vmul.f32 %v3202_v62, %v784_v32  ;;  %v3660_v3 = vmul.f32 %v3553_v19, %v818_v0 }
 0x261   : > { %v814_v1 = vmul.f32 %v812_v52, %v811_v63  ;;  %v863_v6 = vrot.slane %v3660_v3, 2  ;;  %v857_v8 = vrot.slane %v3660_v3, 1  ;;  %v851_v12 = vrot.slane %v3660_v3, 7 }
 0x262   : > { %v845_v41 = vrot.slane %v3660_v3, 6 }
 0x263   : > { %v817_v2 = vadd.f32 %v815_v59, %v814_v1 }
 0x265   : > { %v819_v4 = vadd.f32 %v817_v2, %v3562_v23 }
 0x267   : > { %v3664_v5 = vmul.f32 %v3556_v20, %v819_v4 }
 0x269   : > { %v3150_v9 = vpack.i.bf16 %v3664_v5, %v3660_v3  ;;  %v864_v10 = vrot.slane %v3664_v5, 2  ;;  %v858_v21 = vrot.slane %v3664_v5, 1  ;;  %v852_v11 = vrot.slane %v3664_v5, 7 }
 0x26a   : > { %v846_v39 = vrot.slane %v3664_v5, 6 }
 0x26b   : > { %3151 = vrot.lane.b32.xlu0 %v3150_v9, %s4258_s26  ;;  %v866_v23 = vsel %vm655_vm7, %v864_v10, %v863_v6  ;;  %v860_v13 = vsel %vm648_vm9, %v858_v21, %v857_v8  ;;  %v854_v18 = vsel %vm641_vm10, %v852_v11, %v851_v12  ;;  %v865_v22 = vsel %vm655_vm7, %v863_v6, %v864_v10 }
 0x26c   : > { %v868_v14 = vmul.f32 %v3565_v24, %v866_v23  ;;  %v862_v17 = vmul.f32 %v3571_v26, %v860_v13  ;;  %v859_v25 = vsel %vm648_vm9, %v857_v8, %v858_v21  ;;  %v855_v27 = vmul.f32 %v3580_v31, %v854_v18  ;;  %v2992_v24 = vld [vmem:[%s4219_s5 + $0x80] sm:$0xff]  ;;  %v2997_v23 = vld [vmem:[%s4221_s7 + $0x8] sm:$0xff] }
 0x26d   : > { %v853_v30 = vsel %vm641_vm10, %v851_v12, %v852_v11  ;;  %966 = vmatpush.bf16.msra.mxu3 %v2992_v24  ;;  %v848_v43 = vsel %vm634_vm12, %v846_v39, %v845_v41  ;;  %v847_v49 = vsel %vm634_vm12, %v845_v41, %v846_v39  ;;  %1068 = vmatpush.bf16.msrb.mxu2 %v2997_v23 }
 0x26e   : > { %v900_v28 = vpack.c.bf16 %v868_v14, %v865_v22  ;;  %v3155_v29 = vpack.i.bf16 %v862_v17, %v859_v25  ;;  %v3145_v32 = vpack.i.bf16 %v853_v30, %v855_v27  ;;  %v849_v48 = vmul.f32 %v3633_v57, %v848_v43  ;;  %v2541_v57 = vld [vmem:[%s4220_s6 + $0x4] sm:$0x7] }
 0x26f   : > { %v901_v61 = vperm.slane %v2541_v57, 0  ;;  %v2996_v14 = vld [vmem:[%s4221_s7] sm:$0xff]  ;;  %v1022_v39 = vperm.slane %v2541_v57, 2 }
 0x270   : > { %2602 = vmatmul.msk.bf16.vlgmr.msrb.gmra.mxu0 %vm591_vm2, %v900_v28  ;;  %3156 = vrot.lane.b32.xlu1 %v3155_v29, %s4259_s18 }
 0x271   : > { %3146 = vrot.lane.b32.xlu2 %v3145_v32, %s4260_s2  ;;  %967 = vmatpush.bf16.msra.mxu3 %v2991_v33 }
 0x272   : > { %1069 = vmatpush.bf16.msrb.mxu2 %v2996_v14 }
 0x275   : > { %968 = vmatpush.bf16.msra.mxu3 %v2990_v34  ;;  %v1019_v34 = vperm.slane %v2541_v57, 1 }
 0x279   : > { %969 = vmatpush.bf16.msra.mxu3 %v2989_v35 }
 0x27d   : > { %970 = vmatpush.bf16.msra.mxu3 %v2988_v36 }
 0x281   : > { %971 = vmatpush.bf16.msra.mxu3 %v2987_v37 }
 0x285   : > { %972 = vmatpush.bf16.msra.mxu3 %v2986_v38 }
 0x2cb   : > { %v3147_v40 = vpop.permute.xlu2 %3146 }
 0x2cc   : > { %v3149_v44 = vunpack.i.h.bf16 %v3147_v40  ;;  %v3148_v45 = vunpack.i.l.bf16 %v3147_v40 }
 0x2ce   : > { %v893_v51 = vsel %vm591_vm2, %v849_v48, %v3148_v45  ;;  %v894_v52 = vsel %vm591_vm2, %v847_v49, %v3149_v44  ;;  %v1030_v49 = vld [vmem:[%s4261_s3 + $0x8] sm:$0xff] }
 0x2dd   : > { %v3152_v42 = vpop.permute.xlu0 %3151 }
 0x2de   : > { %v3154_v46 = vunpack.i.h.bf16 %v3152_v42  ;;  %v3153_v47 = vunpack.i.l.bf16 %v3152_v42 }
 0x2e0   : > { %v895_v55 = vsel %vm686_vm13, %v893_v51, %v3153_v47  ;;  %v896_v56 = vsel %vm686_vm13, %v894_v52, %v3154_v46  ;;  %v1029_v46 = vld [vmem:[%s4261_s3] sm:$0xff]  ;;  %v1031_v47 = vstv %s523_s4 }
 0x2e1   : > { %v1032_v52 = vmul.f32 %v1031_v47, %v1029_v46 }
 0x2e2   : > { %v3157_v50 = vpop.permute.xlu1 %3156 }
 0x2e3   : > { %v3159_v53 = vunpack.i.h.bf16 %v3157_v50  ;;  %v3158_v54 = vunpack.i.l.bf16 %v3157_v50 }
 0x2e5   : > { %v897_v58 = vsel %vm689_vm14, %v895_v55, %v3158_v54  ;;  %v898_v59 = vsel %vm689_vm14, %v896_v56, %v3159_v53  ;;  %v1033_v54 = vmul.f32 %v1031_v47, %v1030_v49 }
 0x2e6   : > { %v899_v60 = vpack.c.bf16 %v898_v59, %v897_v58 }
 0x2e8   : > { %973 = vmatmul.bf16.vlgmr.msra.gmra.mxu3 %v899_v60 }
 0x2ed   : > { %v988_v62 = vpop.f32.mrf.mxu0 }
 0x2f5   : > { %v990_v8 = vpop.f32.mrf.mxu0 }
 0x36b   : > { %v974_v63 = vpop.f32.mrf.mxu3 }
 0x36c   : > { %v975_v0 = vadd.f32 %v974_v63, %v901_v61 }
 0x36e   : > { %v989_v1 = vadd.f32 %v988_v62, %v975_v0 }
 0x370   : > { %v993_v2 = vmul.f32 1.442695, %v989_v1 }
 0x372   : > { %3203 = vpow2.f32 %v993_v2 }
 0x373   : > { %v976_v4 = vpop.f32.mrf.mxu3 }
 0x374   : > { %v977_v6 = vadd.f32 %v976_v4, %v901_v61 }
 0x376   : > { %v991_v9 = vadd.f32 %v990_v8, %v977_v6 }
 0x378   : > { %v3204_v10 = vpop.eup %3203  ;;  %v995_v21 = vmul.f32 1.442695, %v991_v9 }
 0x379   : > { %v997_v11 = vadd.f32 1.0, %v3204_v10  ;;  %v1000_v12 = vmul.f32 -0.5, %v3204_v10  ;;  %v1003_v17 = vand.u32 2147483647, %v3204_v10 }
 0x37a   : > { %3205 = vpow2.f32 %v995_v21 }
 0x37b   : > { %3207 = vlog2.f32 %v997_v11  ;;  %v1001_v13 = vadd.f32 1.0, %v1000_v12  ;;  %vm1004_vm1 = vcmp.lt.f32.partialorder %v1003_v17, 0.0004427343 }
 0x37d   : > { %v1002_v28 = vmul.f32 %v3204_v10, %v1001_v13  ;;  %v3374_v10 = vmov -1e+30  }
 0x37e   : > { %v3776_v21 = vsel %vm1038_vm5, 0.0, %v3374_v10 }
 0x380   : > { %v3206_v18 = vpop.eup %3205 }
 0x381   : > { %v3208_v22 = vpop.eup %3207  ;;  %v1006_v25 = vadd.f32 1.0, %v3206_v18  ;;  %v1009_v29 = vmul.f32 -0.5, %v3206_v18  ;;  %v1012_v24 = vand.u32 2147483647, %v3206_v18 }
 0x382   : > { %v999_v27 = vmul.f32 0.6931472, %v3208_v22 }
 0x383   : > { %3209 = vlog2.f32 %v1006_v25  ;;  %v1010_v32 = vadd.f32 1.0, %v1009_v29  ;;  %vm1013_vm3 = vcmp.lt.f32.partialorder %v1012_v24, 0.0004427343 }
 0x384   : > { %v1005_v30 = vsel %vm1004_vm1, %v1002_v28, %v999_v27 }
 0x385   : > { %3211 = vtanh.f32 %v1005_v30  ;;  %v1011_v36 = vmul.f32 %v3206_v18, %v1010_v32 }
 0x389   : > { %v3210_v33 = vpop.eup %3209 }
 0x38a   : > { %v1008_v35 = vmul.f32 0.6931472, %v3210_v33 }
 0x38b   : > { %v3212_v37 = vpop.eup %3211 }
 0x38c   : > { %v1017_v38 = vmul.f32 %v3212_v37, %v989_v1  ;;  %v1014_v40 = vsel %vm1013_vm3, %v1011_v36, %v1008_v35 }
 0x38d   : > { %3213 = vtanh.f32 %v1014_v40 }
 0x38e   : > { %v1020_v41 = vmul.f32 %v1019_v34, %v1017_v38 }
 0x390   : > { %v1023_v42 = vadd.f32 %v1022_v39, %v1020_v41 }
 0x392   : > { %v1025_v44 = vadd.f32 %v1023_v42, %v3660_v3 }
 0x393   : > { %v3214_v43 = vpop.eup %3213 }
 0x394   : > { %v1018_v45 = vmul.f32 %v3214_v43, %v991_v9  ;;  %v1027_v50 = vmul.f32 %v3553_v19, %v1025_v44 }
 0x396   : > { %v1021_v48 = vmul.f32 %v1019_v34, %v1018_v45  ;;  %v1034_v55 = vadd.f32 %v1032_v52, %v1027_v50 }
 0x398   : > { %v1024_v51 = vadd.f32 %v1022_v39, %v1021_v48  ;;  %v3747_v58 = vmul.f32 %v3553_v19, %v1034_v55 }
 0x39a   : > { %v1026_v53 = vadd.f32 %v1024_v51, %v3664_v5  ;;  %v3758_v5 = vld [vmem:[%s4225_s11] sm:$0xff] }
 0x39b   : > { %v1046_v61 = vperm.slane %v3758_v5, 0 }
 0x39c   : > { %v1028_v3 = vmul.f32 %v3556_v20, %v1026_v53 }
 0x39e   : > { %v1035_v56 = vadd.f32 %v1033_v54, %v1028_v3 }
 0x3a0   : > { %v3750_v59 = vmul.f32 %v3556_v20, %v1035_v56 }
 0x3a2   : > { %v1041_v60 = vpack.c.bf16 %v3750_v59, %v3747_v58 }
 0x3a4   : > { %2611 = vmatmul.msk.bf16.vlgmr.msrb.gmra.mxu2 %vm591_vm2, %v1041_v60 }
 0x427   : > { %v1071_v57 = vpop.f32.mrf.mxu2 }
 0x428   : > { %v1072_v63 = vadd.f32 %v1071_v57, %v1046_v61 }
 0x42f   : > { %v1073_v62 = vpop.f32.mrf.mxu2 }
 0x430   : > { %v1074_v0 = vadd.f32 %v1073_v62, %v1046_v61 }
 0x432   : > { %v3761_v1 = vpack.c.bf16 %v1074_v0, %v1072_v63 }
 0x434   : > { %1078 = vrot.lane.b32.xlu1 %v3761_v1, %s4259_s18  ;;  %1144 = vrot.lane.b32.xlu0 %v3761_v1, %s4244_s27  ;;  %s4265_s27 = smov 16  }
 0x435   : > { %1146 = vrot.lane.b32.xlu2 %v3761_v1, %s4243_s16 }
 0x48f   : > { %v1147_v2 = vpop.permute.xlu2 %1146 }
 0x490   : > { %v1152_v4 = vsel %vm1080_vm4, %v1147_v2, 0 }
 0x491   : > { %1161 = vmatpush.bf16.xpose.msrb.mxu1 %v1152_v4 }
 0x4a6   : > { %v1079_v6 = vpop.permute.xlu1 %1078  ;;  %v1145_v8 = vpop.permute.xlu0 %1144 }
 0x4a7   : > { %v1085_v9 = vsel %vm1080_vm4, %v1079_v6, 0  ;;  %2614 = vmatmul.msk.bf16.vlgmr.msrb.gmra.mxu1 %vm1080_vm4, %v1145_v8  ;;  %v2998_v8 = vld [vmem:[%s4222_s8] sm:$0xff] }
 0x4a8   : > { %1094 = vmatpush.bf16.xpose.msra.mxu0 %v1085_v9 }
 0x4af   : > { %2612 = vmatmul.msk.bf16.vlgmr.msra.gmra.mxu0 %vm1080_vm4, %v3761_v1 }
 0x524   : > { %v1163_v11 = vpop.f32.mrf.mxu1 }
 0x525   : > { %v1164_v12 = vadd.f32 %v1163_v11, %v3776_v21 }
 0x527   : > { %v1168_v23 = vsel %vm1080_vm4, %v1164_v12, -inf }
 0x528   : > { %1169 = vmax.xlane.f32.xlu2 %v1168_v23 }
 0x52c   : > { %v1096_v13 = vpop.f32.mrf.mxu0  ;;  %v1165_v14 = vpop.f32.mrf.mxu1 }
 0x52d   : > { %v1097_v17 = vadd.f32 %v1096_v13, %v3776_v21  ;;  %v1166_v18 = vadd.f32 %v1165_v14, %v3776_v21 }
 0x52f   : > { %v1101_v22 = vsel %vm1080_vm4, %v1097_v17, -inf  ;;  %v1171_v25 = vsel %vm1080_vm4, %v1166_v18, -inf }
 0x530   : > { %1102 = vmax.xlane.f32.xlu1 %v1101_v22  ;;  %1172 = vmax.xlane.f32.xlu0 %v1171_v25  ;;  %v3005_v22 = vld [vmem:[%s4223_s9 + $0x28] sm:$0xff] }
 0x534   : > { %v1098_v7 = vpop.f32.mrf.mxu0 }
 0x535   : > { %v1099_v16 = vadd.f32 %v1098_v7, %v3776_v21 }
 0x537   : > { %v1104_v27 = vsel %vm1080_vm4, %v1099_v16, -inf }
 0x538   : > { %1105 = vmax.xlane.f32.xlu2 %v1104_v27 }
 0x549   : > { %1191 = vrot.lane.b32.xlu1 %v3761_v1, %s4242_s17  ;;  %s4262_s17 = smov 112  }
 0x59b   : > { %v1170_v28 = vpop.xlane.xlu2 %1169 }
 0x59c   : > { %v1174_v29 = vsub.f32 %v1164_v12, %v1170_v28 }
 0x59e   : > { %v1176_v30 = vmul.f32 1.442695, %v1174_v29  ;;  %v1260_v29 = vperm.slane %v3758_v5, 2 }
 0x5a0   : > { %3215 = vpow2.f32 %v1176_v30  ;;  %v3003_v30 = vld [vmem:[%s4223_s9 + $0x18] sm:$0xff] }
 0x5a3   : > { %v1103_v32 = vpop.xlane.xlu1 %1102  ;;  %v1173_v24 = vpop.xlane.xlu0 %1172 }
 0x5a4   : > { %v1107_v33 = vsub.f32 %v1097_v17, %v1103_v32  ;;  %v1175_v34 = vsub.f32 %v1166_v18, %v1173_v24  ;;  %v1226_v18 = vperm.slane %v3758_v5, 1 }
 0x5a6   : > { %v3216_v35 = vpop.eup %3215  ;;  %v1109_v36 = vmul.f32 1.442695, %v1107_v33  ;;  %v1178_v37 = vmul.f32 1.442695, %v1175_v34  ;;  %v1263_v33 = vperm.slane %v3758_v5, 3 }
 0x5a7   : > { %v1180_v38 = vsel %vm1080_vm4, %v3216_v35, 0.0 }
 0x5a8   : > { %3217 = vpow2.f32 %v1109_v36  ;;  %1181 = vadd.xlane.f32.xlu2 %v1180_v38 }
 0x5a9   : > { %3219 = vpow2.f32 %v1178_v37 }
 0x5ab   : > { %v1106_v39 = vpop.xlane.xlu2 %1105 }
 0x5ac   : > { %v1108_v40 = vsub.f32 %v1099_v16, %v1106_v39  ;;  %v3004_v16 = vld [vmem:[%s4223_s9 + $0x20] sm:$0xff] }
 0x5ae   : > { %v3218_v41 = vpop.eup %3217  ;;  %v1111_v42 = vmul.f32 1.442695, %v1108_v40 }
 0x5af   : > { %v3220_v43 = vpop.eup %3219  ;;  %v1113_v44 = vsel %vm1080_vm4, %v3218_v41, 0.0 }
 0x5b0   : > { %3221 = vpow2.f32 %v1111_v42  ;;  %v1183_v45 = vsel %vm1080_vm4, %v3220_v43, 0.0  ;;  %1114 = vadd.xlane.f32.xlu2 %v1113_v44 }
 0x5b1   : > { %1184 = vadd.xlane.f32.xlu0 %v1183_v45 }
 0x5b6   : > { %v3222_v46 = vpop.eup %3221 }
 0x5b7   : > { %v1116_v47 = vsel %vm1080_vm4, %v3222_v46, 0.0 }
 0x5b9   : > { %1117 = vadd.xlane.f32.xlu0 %v1116_v47  ;;  %v3002_v47 = vld [vmem:[%s4223_s9 + $0x10] sm:$0xff] }
 0x5bb   : > { %v1192_v48 = vpop.permute.xlu1 %1191 }
 0x5bc   : > { %1204 = vmatpush.bf16.msrb.mxu3 %v1192_v48  ;;  %v3001_v48 = vld [vmem:[%s4223_s9 + $0x8] sm:$0xff] }
 0x5c8   : > { %1124 = vrot.lane.b32.xlu2 %v3761_v1, %s4258_s26  ;;  %v2999_v1 = vld [vmem:[%s4222_s8 + $0x8] sm:$0xff] }
 0x5c9   : > { %1248 = vmatpush.bf16.msrb.mxu0 %v2999_v1 }
 0x5cd   : > { %1249 = vmatpush.bf16.msrb.mxu0 %v2998_v8  ;;  %v3013_v8 = vld [vmem:[%s4224_s10 + $0x38] sm:$0xff] }
 0x5ce   : > { %1603 = vmatpush.bf16.msra.mxu1 %v3013_v8 }
 0x61b   : > { %v1182_v49 = vpop.xlane.xlu2 %1181 }
 0x61c   : > { %3223 = vrcp.f32 %v1182_v49  ;;  %v3000_v49 = vld [vmem:[%s4223_s9] sm:$0xff] }
 0x622   : > { %v3224_v52 = vpop.eup %3223 }
 0x623   : > { %v1115_v50 = vpop.xlane.xlu2 %1114  ;;  %v1188_v3 = vmul.f32 %v3224_v52, %v3216_v35 }
 0x624   : > { %v1185_v51 = vpop.xlane.xlu0 %1184 }
 0x625   : > { %3225 = vrcp.f32 %v1185_v51 }
 0x626   : > { %3227 = vrcp.f32 %v1115_v50 }
 0x62b   : > { %v3226_v53 = vpop.eup %3225  ;;  %v1125_v54 = vpop.permute.xlu2 %1124 }
 0x62c   : > { %v1189_v55 = vmul.f32 %v3226_v53, %v3220_v43  ;;  %v1118_v56 = vpop.xlane.xlu0 %1117  ;;  %1137 = vmatpush.bf16.msra.mxu2 %v1125_v54  ;;  %v3228_v57 = vpop.eup %3227 }
 0x62d   : > { %3229 = vrcp.f32 %v1118_v56  ;;  %v1121_v62 = vmul.f32 %v3228_v57, %v3218_v41 }
 0x62e   : > { %v1190_v60 = vpack.c.bf16 %v1189_v55, %v1188_v3 }
 0x630   : > { %2615 = vmatmul.msk.bf16.vlgmr.msrb.gmra.mxu3 %vm1080_vm4, %v1190_v60  ;;  %1355 = vmatpush.bf16.msrb.mxu2 %v3005_v22  ;;  %v3010_v22 = vld [vmem:[%s4224_s10 + $0x20] sm:$0xff] }
 0x633   : > { %v3230_v61 = vpop.eup %3229 }
 0x634   : > { %v1122_v63 = vmul.f32 %v3230_v61, %v3222_v46  ;;  %1356 = vmatpush.bf16.msrb.mxu2 %v3004_v16 }
 0x636   : > { %v1123_v0 = vpack.c.bf16 %v1122_v63, %v1121_v62 }
 0x638   : > { %2613 = vmatmul.msk.bf16.vlgmr.msra.gmra.mxu2 %vm1080_vm4, %v1123_v0 }
 0x639   : > { %1357 = vmatpush.bf16.msrb.mxu2 %v3003_v30 }
 0x63d   : > { %1358 = vmatpush.bf16.msrb.mxu2 %v3002_v47 }
 0x641   : > { %1359 = vmatpush.bf16.msrb.mxu2 %v3001_v48 }
 0x645   : > { %1360 = vmatpush.bf16.msrb.mxu2 %v3000_v49 }
 0x6b3   : > { %v1206_v2 = vpop.f32.mrf.mxu3 }
 0x6bb   : > { %v1208_v4 = vpop.f32.mrf.mxu3  ;;  %v1139_v9 = vpop.f32.mrf.mxu2 }
 0x6bc   : > { %v3160_v6 = vpack.i.bf16 %v1208_v4, %v1206_v2  ;;  %v3021_v4 = vld [vmem:[%s4224_s10 + $0x78] sm:$0xff] }
 0x6bd   : > { %1617 = vmatpush.bf16.msra.mxu3 %v3021_v4 }
 0x6be   : > { %3161 = vrot.lane.b32.xlu0 %v3160_v6, %s4241_s0  ;;  %v3020_v6 = vld [vmem:[%s4224_s10 + $0x70] sm:$0xff]  ;;  %s4263_s0 = smov 80  }
 0x6c1   : > { %1618 = vmatpush.bf16.msra.mxu3 %v3020_v6 }
 0x6c3   : > { %v1141_v23 = vpop.f32.mrf.mxu2 }
 0x730   : > { %v3162_v10 = vpop.permute.xlu0 %3161 }
 0x731   : > { %v3164_v11 = vunpack.i.h.bf16 %v3162_v10  ;;  %v3163_v12 = vunpack.i.l.bf16 %v3162_v10  ;;  %v3019_v10 = vld [vmem:[%s4224_s10 + $0x68] sm:$0xff] }
 0x732   : > { %1619 = vmatpush.bf16.msra.mxu3 %v3019_v10 }
 0x733   : > { %v1219_v13 = vsel %vm1080_vm4, %v1139_v9, %v3163_v12  ;;  %v1220_v14 = vsel %vm1080_vm4, %v1141_v23, %v3164_v11  ;;  %v3029_v9 = vld [vmem:[%s4224_s10 + $0xb8] sm:$0xff]  ;;  %v3012_v11 = vld [vmem:[%s4224_s10 + $0x30] sm:$0xff]  ;;  %v3018_v23 = vld [vmem:[%s4224_s10 + $0x60] sm:$0xff] }
 0x734   : > { %v1221_v17 = vpack.c.bf16 %v1220_v14, %v1219_v13  ;;  %1631 = vmatpush.bf16.msra.mxu0 %v3029_v9  ;;  %v3028_v12 = vld [vmem:[%s4224_s10 + $0xb0] sm:$0xff]  ;;  %1604 = vmatpush.bf16.msra.mxu1 %v3012_v11  ;;  %v3011_v13 = vld [vmem:[%s4224_s10 + $0x28] sm:$0xff] }
 0x735   : > { %v3027_v14 = vld [vmem:[%s4224_s10 + $0xa8] sm:$0xff] }
 0x736   : > { %2624 = vmatmul.msk.bf16.vlgmr.msrb.gmra.mxu0 %vm591_vm2, %v1221_v17  ;;  %1620 = vmatpush.bf16.msra.mxu3 %v3018_v23  ;;  %v1313_v17 = vperm.slane %v3758_v5, 4 }
 0x738   : > { %1632 = vmatpush.bf16.msra.mxu0 %v3028_v12  ;;  %1605 = vmatpush.bf16.msra.mxu1 %v3011_v13 }
 0x73c   : > { %1633 = vmatpush.bf16.msra.mxu0 %v3027_v14  ;;  %1606 = vmatpush.bf16.msra.mxu1 %v3010_v22 }
 0x7b3   : > { %v1251_v25 = vpop.f32.mrf.mxu0 }
 0x7b4   : > { %v1252_v7 = vadd.f32 %v1251_v25, %v1226_v18  ;;  %v3026_v25 = vld [vmem:[%s4224_s10 + $0xa0] sm:$0xff] }
 0x7b5   : > { %1634 = vmatpush.bf16.msra.mxu0 %v3026_v25  ;;  %v3031_v25 = vld [vmem:[%s4221_s7 + $0x18] sm:$0xff] }
 0x7b6   : > { %v1256_v27 = vadd.f32 %v1252_v7, %v3747_v58  ;;  %1687 = vmatpush.bf16.msra.mxu2 %v3031_v25 }
 0x7b8   : > { %v1258_v28 = vmul.f32 %v3553_v19, %v1256_v27  ;;  %v3016_v27 = vld [vmem:[%s4224_s10 + $0x50] sm:$0xff] }
 0x7ba   : > { %v1261_v24 = vmul.f32 %v1260_v29, %v1258_v28  ;;  %v3009_v28 = vld [vmem:[%s4224_s10 + $0x18] sm:$0xff] }
 0x7bb   : > { %v1253_v32 = vpop.f32.mrf.mxu0  ;;  %1607 = vmatpush.bf16.msra.mxu1 %v3009_v28 }
 0x7bc   : > { %v1254_v34 = vadd.f32 %v1253_v32, %v1226_v18  ;;  %v1264_v36 = vadd.f32 %v1263_v33, %v1261_v24  ;;  %v3017_v18 = vld [vmem:[%s4224_s10 + $0x58] sm:$0xff]  ;;  %v3015_v32 = vld [vmem:[%s4224_s10 + $0x48] sm:$0xff]  ;;  %v3008_v24 = vld [vmem:[%s4224_s10 + $0x10] sm:$0xff] }
 0x7bd   : > { %1621 = vmatpush.bf16.msra.mxu3 %v3017_v18 }
 0x7be   : > { %v1257_v35 = vadd.f32 %v1254_v34, %v3750_v59  ;;  %v3823_v38 = vmul.f32 %v3553_v19, %v1264_v36  ;;  %v3014_v36 = vld [vmem:[%s4224_s10 + $0x40] sm:$0xff] }
 0x7bf   : > { %1608 = vmatpush.bf16.msra.mxu1 %v3008_v24 }
 0x7c0   : > { %v1259_v58 = vmul.f32 %v3556_v20, %v1257_v35  ;;  %v1286_v42 = vrot.slane %v3823_v38, 1  ;;  %v1280_v52 = vrot.slane %v3823_v38, 7 }
 0x7c1   : > { %1622 = vmatpush.bf16.msra.mxu3 %v3016_v27 }
 0x7c2   : > { %v1262_v37 = vmul.f32 %v1260_v29, %v1259_v58  ;;  %v3025_v29 = vld [vmem:[%s4224_s10 + $0x98] sm:$0xff]  ;;  %v3007_v58 = vld [vmem:[%s4224_s10 + $0x8] sm:$0xff] }
 0x7c3   : > { %1635 = vmatpush.bf16.msra.mxu0 %v3025_v29  ;;  %1609 = vmatpush.bf16.msra.mxu1 %v3007_v58 }
 0x7c4   : > { %v1265_v39 = vadd.f32 %v1263_v33, %v1262_v37  ;;  %v3024_v33 = vld [vmem:[%s4224_s10 + $0x90] sm:$0xff]  ;;  %v3023_v37 = vld [vmem:[%s4224_s10 + $0x88] sm:$0xff] }
 0x7c5   : > { %1623 = vmatpush.bf16.msra.mxu3 %v3015_v32 }
 0x7c6   : > { %v3826_v40 = vmul.f32 %v3556_v20, %v1265_v39 }
 0x7c7   : > { %1636 = vmatpush.bf16.msra.mxu0 %v3024_v33 }
 0x7c8   : > { %v3165_v41 = vpack.i.bf16 %v3826_v40, %v3823_v38  ;;  %v1287_v43 = vrot.slane %v3826_v40, 1  ;;  %v1281_v51 = vrot.slane %v3826_v40, 7 }
 0x7c9   : > { %1624 = vmatpush.bf16.msra.mxu3 %v3014_v36 }
 0x7ca   : > { %3166 = vrot.lane.b32.xlu1 %v3165_v41, %s4260_s2  ;;  %v1289_v59 = vsel %vm648_vm9, %v1287_v43, %v1286_v42  ;;  %v1288_v45 = vsel %vm648_vm9, %v1286_v42, %v1287_v43  ;;  %v1283_v53 = vsel %vm641_vm10, %v1281_v51, %v1280_v52  ;;  %v1282_v60 = vsel %vm641_vm10, %v1280_v52, %v1281_v51 }
 0x7cb   : > { %v1291_v44 = vmul.f32 %v3571_v26, %v1289_v59  ;;  %v1284_v55 = vmul.f32 %v3580_v31, %v1283_v53  ;;  %1637 = vmatpush.bf16.msra.mxu0 %v3023_v37  ;;  %v3006_v59 = vld [vmem:[%s4224_s10] sm:$0xff]  ;;  %v1649_v37 = vperm.slane %v3758_v5, 6 }
 0x7cc   : > { %1610 = vmatpush.bf16.msra.mxu1 %v3006_v59  ;;  %v1652_v59 = vperm.slane %v3758_v5, 7 }
 0x7cd   : > { %v3170_v46 = vpack.i.bf16 %v1291_v44, %v1288_v45  ;;  %v3022_v44 = vld [vmem:[%s4224_s10 + $0x80] sm:$0xff] }
 0x7cf   : > { %1638 = vmatpush.bf16.msra.mxu0 %v3022_v44 }
 0x7d2   : > { %3171 = vrot.lane.b32.xlu1 %v3170_v46, %s4258_s26 }
 0x83c   : > { %v3167_v50 = vpop.permute.xlu1 %3166 }
 0x83d   : > { %v3169_v54 = vunpack.i.h.bf16 %v3167_v50  ;;  %v3168_v3 = vunpack.i.l.bf16 %v3167_v50 }
 0x83f   : > { %v1308_v62 = vsel %vm591_vm2, %v1284_v55, %v3168_v3  ;;  %v1309_v63 = vsel %vm591_vm2, %v1282_v60, %v3169_v54 }
 0x844   : > { %v3172_v56 = vpop.permute.xlu1 %3171 }
 0x845   : > { %v3174_v57 = vunpack.i.h.bf16 %v3172_v56  ;;  %v3173_v61 = vunpack.i.l.bf16 %v3172_v56 }
 0x847   : > { %v1310_v0 = vsel %vm686_vm13, %v1308_v62, %v3173_v61  ;;  %v1311_v1 = vsel %vm686_vm13, %v1309_v63, %v3174_v57 }
 0x848   : > { %v1312_v2 = vpack.c.bf16 %v1311_v1, %v1310_v0 }
 0x84a   : > { %2649 = vmatmul.msk.bf16.vlgmr.msrb.gmra.mxu2 %vm689_vm14, %v1312_v2 }
 0x8cd   : > { %v1362_v7 = vpop.f32.mrf.mxu2 }
 0x8ce   : > { %v1363_v16 = vadd.f32 %v1362_v7, %v1313_v17  ;;  %v3030_v7 = vld [vmem:[%s4221_s7 + $0x10] sm:$0xff] }
 0x8cf   : > { %1688 = vmatpush.bf16.msra.mxu2 %v3030_v7 }
 0x8d0   : > { %v1367_v30 = vmul.f32 1.442695, %v1363_v16 }
 0x8d2   : > { %3231 = vpow2.f32 %v1367_v30 }
 0x8d5   : > { %v1364_v34 = vpop.f32.mrf.mxu2 }
 0x8d6   : > { %v1365_v35 = vadd.f32 %v1364_v34, %v1313_v17 }
 0x8d8   : > { %v3232_v39 = vpop.eup %3231  ;;  %v1369_v41 = vmul.f32 1.442695, %v1365_v35 }
 0x8d9   : > { %v1371_v42 = vadd.f32 1.0, %v3232_v39  ;;  %v1374_v43 = vmul.f32 -0.5, %v3232_v39  ;;  %v1377_v46 = vand.u32 2147483647, %v3232_v39 }
 0x8da   : > { %3233 = vpow2.f32 %v1369_v41 }
 0x8db   : > { %3235 = vlog2.f32 %v1371_v42  ;;  %v1375_v45 = vadd.f32 1.0, %v1374_v43  ;;  %vm1378_vm6 = vcmp.lt.f32.partialorder %v1377_v46, 0.0004427343 }
 0x8dd   : > { %v1376_v51 = vmul.f32 %v3232_v39, %v1375_v45 }
 0x8e0   : > { %v3234_v47 = vpop.eup %3233 }
 0x8e1   : > { %v3236_v48 = vpop.eup %3235  ;;  %v1380_v49 = vadd.f32 1.0, %v3234_v47  ;;  %v1383_v52 = vmul.f32 -0.5, %v3234_v47  ;;  %v1386_v3 = vand.u32 2147483647, %v3234_v47 }
 0x8e2   : > { %v1373_v50 = vmul.f32 0.6931472, %v3236_v48 }
 0x8e3   : > { %3237 = vlog2.f32 %v1380_v49  ;;  %v1384_v54 = vadd.f32 1.0, %v1383_v52  ;;  %vm1387_vm7 = vcmp.lt.f32.partialorder %v1386_v3, 0.0004427343 }
 0x8e4   : > { %v1379_v53 = vsel %vm1378_vm6, %v1376_v51, %v1373_v50 }
 0x8e5   : > { %3239 = vtanh.f32 %v1379_v53  ;;  %v1385_v60 = vmul.f32 %v3234_v47, %v1384_v54 }
 0x8e9   : > { %v3238_v55 = vpop.eup %3237 }
 0x8ea   : > { %v1382_v56 = vmul.f32 0.6931472, %v3238_v55 }
 0x8eb   : > { %v3240_v57 = vpop.eup %3239 }
 0x8ec   : > { %v1388_v61 = vsel %vm1387_vm7, %v1385_v60, %v1382_v56  ;;  %v1391_v62 = vmul.f32 %v3240_v57, %v1363_v16  ;;  %v1458_v16 = vperm.slane %v3758_v5, 5  ;;  %v3970_v5 = vld [vmem:[%s4225_s11 + $0x8] sm:$0xff] }
 0x8ed   : > { %3241 = vtanh.f32 %v1388_v61 }
 0x8ee   : > { %v1393_v0 = vmul.f32 %v3553_v19, %v1391_v62 }
 0x8f0   : > { %v1443_v4 = vrot.slane %v1393_v0, 7  ;;  %v1449_v6 = vrot.slane %v1393_v0, 1 }
 0x8f3   : > { %v3242_v63 = vpop.eup %3241 }
 0x8f4   : > { %v1392_v1 = vmul.f32 %v3242_v63, %v1365_v35 }
 0x8f6   : > { %v1394_v2 = vmul.f32 %v3556_v20, %v1392_v1 }
 0x8f8   : > { %v1444_v8 = vrot.slane %v1394_v2, 7  ;;  %v1450_v9 = vrot.slane %v1394_v2, 1  ;;  %v1456_v10 = vpack.c.bf16 %v1394_v2, %v1393_v0 }
 0x8fa   : > { %1625 = vmatmul.bf16.vlgmr.msra.gmra.mxu3 %v1456_v10  ;;  %v1446_v11 = vsel %vm641_vm10, %v1444_v8, %v1443_v4  ;;  %v1452_v12 = vsel %vm648_vm9, %v1450_v9, %v1449_v6  ;;  %v1445_v14 = vsel %vm641_vm10, %v1443_v4, %v1444_v8  ;;  %v1451_v17 = vsel %vm648_vm9, %v1449_v6, %v1450_v9 }
 0x8fb   : > { %v1447_v23 = vmul.f32 %v3580_v31, %v1446_v11  ;;  %v1454_v13 = vmul.f32 %v3571_v26, %v1452_v12 }
 0x8fd   : > { %v1455_v18 = vpack.c.bf16 %v1445_v14, %v1447_v23  ;;  %v1457_v22 = vpack.c.bf16 %v1454_v13, %v1451_v17 }
 0x8ff   : > { %1611 = vmatmul.bf16.vlgmr.msra.gmra.mxu1 %v1455_v18  ;;  %1639 = vmatmul.bf16.vlgmr.msra.gmra.mxu0 %v1457_v22 }
 0x97c   : > { %v1612_v27 = vpop.f32.mrf.mxu1  ;;  %v1640_v30 = vpop.f32.mrf.mxu0 }
 0x97d   : > { %v1613_v28 = vadd.f32 %v1612_v27, %v1458_v16  ;;  %v1626_v29 = vpop.f32.mrf.mxu3 }
 0x97f   : > { %v1627_v32 = vadd.f32 %v1626_v29, %v1613_v28 }
 0x981   : > { %v1641_v24 = vadd.f32 %v1640_v30, %v1627_v32 }
 0x983   : > { %v1645_v33 = vadd.f32 %v1641_v24, %v3823_v38 }
 0x984   : > { %v1614_v34 = vpop.f32.mrf.mxu1  ;;  %v1642_v41 = vpop.f32.mrf.mxu0 }
 0x985   : > { %v1615_v35 = vadd.f32 %v1614_v34, %v1458_v16  ;;  %v1628_v36 = vpop.f32.mrf.mxu3  ;;  %v1647_v58 = vmul.f32 %v3553_v19, %v1645_v33 }
 0x987   : > { %v1629_v39 = vadd.f32 %v1628_v36, %v1615_v35  ;;  %v1650_v43 = vmul.f32 %v1649_v37, %v1647_v58 }
 0x989   : > { %v1643_v42 = vadd.f32 %v1642_v41, %v1629_v39  ;;  %v1653_v46 = vadd.f32 %v1652_v59, %v1650_v43 }
 0x98b   : > { %v1646_v44 = vadd.f32 %v1643_v42, %v3826_v40  ;;  %v3959_v48 = vmul.f32 %v3553_v19, %v1653_v46  ;;  %v1665_v40 = vperm.slane %v3970_v5, 0 }
 0x98d   : > { %v1648_v45 = vmul.f32 %v3556_v20, %v1646_v44 }
 0x98f   : > { %v1651_v47 = vmul.f32 %v1649_v37, %v1648_v45 }
 0x991   : > { %v1654_v38 = vadd.f32 %v1652_v59, %v1651_v47 }
 0x993   : > { %v3962_v49 = vmul.f32 %v3556_v20, %v1654_v38 }
 0x995   : > { %v1659_v50 = vpack.c.bf16 %v3962_v49, %v3959_v48 }
 0x997   : > { %2759 = vmatmul.msk.bf16.vlgmr.msra.gmra.mxu2 %vm591_vm2, %v1659_v50 }
 0xa1a   : > { %v1690_v51 = vpop.f32.mrf.mxu2 }
 0xa1b   : > { %v1691_v53 = vadd.f32 %v1690_v51, %v1665_v40 }
 0xa22   : > { %v1692_v52 = vpop.f32.mrf.mxu2 }
 0xa23   : > { %v1693_v54 = vadd.f32 %v1692_v52, %v1665_v40 }
 0xa25   : > { %v1695_v3 = vpack.c.bf16 %v1693_v54, %v1691_v53  ;;  %v3033_v53 = vld [vmem:[%s4222_s8 + $0x18] sm:$0xff] }
 0xa27   : > { %1697 = vrot.lane.b32.xlu1 %v1695_v3, %s4259_s18  ;;  %1762 = vrot.lane.b32.xlu2 %v1695_v3, %s4262_s17  ;;  %s4264_s18 = smov 48  }
 0xa28   : > { %1764 = vrot.lane.b32.xlu0 %v1695_v3, %s4263_s0 }
 0xa81   : > { %v1763_v61 = vpop.permute.xlu2 %1762 }
 0xa99   : > { %v1698_v55 = vpop.permute.xlu1 %1697 }
 0xa9a   : > { %v1703_v56 = vsel %vm1080_vm4, %v1698_v55, 0  ;;  %v1765_v60 = vpop.permute.xlu0 %1764 }
 0xa9b   : > { %v1770_v57 = vsel %vm1080_vm4, %v1765_v60, 0  ;;  %1712 = vmatpush.bf16.xpose.msrb.mxu1 %v1703_v56  ;;  %v3032_v56 = vld [vmem:[%s4222_s8 + $0x10] sm:$0xff] }
 0xa9c   : > { %1779 = vmatpush.bf16.xpose.msrb.mxu3 %v1770_v57 }
 0xaa2   : > { %2760 = vmatmul.msk.bf16.vlgmr.msrb.gmra.mxu1 %vm1080_vm4, %v1695_v3 }
 0xaa3   : > { %2762 = vmatmul.msk.bf16.vlgmr.msrb.gmra.mxu3 %vm1080_vm4, %v1763_v61  ;;  %1867 = vmatpush.bf16.msra.mxu1 %v3033_v53 }
 0xaa7   : > { %1868 = vmatpush.bf16.msra.mxu1 %v3032_v56  ;;  %v3063_v56 = vld [vmem:[%s4224_s10 + $0x178] sm:$0xff] }
 0xaab   : > { %2252 = vmatpush.bf16.msrb.mxu1 %v3063_v56 }
 0xb1f   : > { %v1714_v62 = vpop.f32.mrf.mxu1 }
 0xb20   : > { %v1715_v63 = vadd.f32 %v1714_v62, %v3776_v21 }
 0xb22   : > { %v1719_v0 = vsel %vm1080_vm4, %v1715_v63, -inf }
 0xb23   : > { %1720 = vmax.xlane.f32.xlu1 %v1719_v0 }
 0xb26   : > { %v1781_v1 = vpop.f32.mrf.mxu3 }
 0xb27   : > { %v1782_v2 = vadd.f32 %v1781_v1, %v3776_v21  ;;  %v1716_v6 = vpop.f32.mrf.mxu1 }
 0xb28   : > { %v1717_v8 = vadd.f32 %v1716_v6, %v3776_v21  ;;  %v3039_v6 = vld [vmem:[%s4223_s9 + $0x58] sm:$0xff] }
 0xb29   : > { %v1786_v4 = vsel %vm1080_vm4, %v1782_v2, -inf }
 0xb2a   : > { %1787 = vmax.xlane.f32.xlu0 %v1786_v4  ;;  %v1722_v12 = vsel %vm1080_vm4, %v1717_v8, -inf  ;;  %v1845_v4 = vperm.slane %v3970_v5, 1 }
 0xb2e   : > { %v1783_v9 = vpop.f32.mrf.mxu3 }
 0xb2f   : > { %v1784_v10 = vadd.f32 %v1783_v9, %v3776_v21 }
 0xb31   : > { %v1789_v11 = vsel %vm1080_vm4, %v1784_v10, -inf }
 0xb32   : > { %1790 = vmax.xlane.f32.xlu2 %v1789_v11  ;;  %1723 = vmax.xlane.f32.xlu0 %v1722_v12 }
 0xb46   : > { %1809 = vrot.lane.b32.xlu0 %v1695_v3, %s4264_s18  ;;  %s2366_s18 = scalar_lea.hbm %s4228_s14, %s3066_s19 }
 0xb47   : > { %s2369_s22 = sshll.u32 %s2366_s18, 4  ;;  %s2370_s22 = int_to_ptr.hbm [resolvable:$true] %s2369_s22 }
 0xb48   : > { %s3312_s16 = sshra.s32 %s2370_s22, 4  ;;  %s3313_s16 = int_to_ptr.hbm [resolvable:$true] %s3312_s16 }
 0xb49   : > { %p3319_p3 = scmp.lt.s32.totalorder %s3313_s16, %s4228_s14 }
 0xb96   : > { %v1721_v23 = vpop.xlane.xlu1 %1720 }
 0xb97   : > { %v1725_v17 = vsub.f32 %v1715_v63, %v1721_v23  ;;  %v1879_v23 = vperm.slane %v3970_v5, 2 }
 0xb99   : > { %v1727_v22 = vmul.f32 1.442695, %v1725_v17 }
 0xb9d   : > { %v1788_v13 = vpop.xlane.xlu0 %1787 }
 0xb9e   : > { %v1792_v14 = vsub.f32 %v1782_v2, %v1788_v13  ;;  %v3037_v13 = vld [vmem:[%s4223_s9 + $0x48] sm:$0xff] }
 0xba0   : > { %v1794_v18 = vmul.f32 1.442695, %v1792_v14 }
 0xba2   : > { %3243 = vpow2.f32 %v1794_v18  ;;  %v1882_v18 = vperm.slane %v3970_v5, 3 }
 0xba3   : > { %3245 = vpow2.f32 %v1727_v22 }
 0xba5   : > { %v1791_v25 = vpop.xlane.xlu2 %1790  ;;  %v1724_v7 = vpop.xlane.xlu0 %1723 }
 0xba6   : > { %v1793_v16 = vsub.f32 %v1784_v10, %v1791_v25  ;;  %v1726_v28 = vsub.f32 %v1717_v8, %v1724_v7  ;;  %v3038_v10 = vld [vmem:[%s4223_s9 + $0x50] sm:$0xff] }
 0xba8   : > { %v3244_v27 = vpop.eup %3243  ;;  %v1796_v21 = vmul.f32 1.442695, %v1793_v16  ;;  %v1729_v30 = vmul.f32 1.442695, %v1726_v28 }
 0xba9   : > { %v1798_v29 = vsel %vm1080_vm4, %v3244_v27, 0.0  ;;  %v3246_v32 = vpop.eup %3245 }
 0xbaa   : > { %3247 = vpow2.f32 %v1796_v21  ;;  %1799 = vadd.xlane.f32.xlu2 %v1798_v29  ;;  %v1731_v34 = vsel %vm1080_vm4, %v3246_v32, 0.0 }
 0xbab   : > { %3249 = vpow2.f32 %v1729_v30 }
 0xbb0   : > { %v3248_v24 = vpop.eup %3247 }
 0xbb1   : > { %v1801_v33 = vsel %vm1080_vm4, %v3248_v24, 0.0  ;;  %v3250_v35 = vpop.eup %3249 }
 0xbb2   : > { %1802 = vadd.xlane.f32.xlu1 %v1801_v33  ;;  %1732 = vadd.xlane.f32.xlu2 %v1731_v34  ;;  %v1734_v58 = vsel %vm1080_vm4, %v3250_v35, 0.0 }
 0xbb8   : > { %v1810_v36 = vpop.permute.xlu0 %1809 }
 0xbb9   : > { %1822 = vmatpush.bf16.msrb.mxu0 %v1810_v36  ;;  %v3035_v36 = vld [vmem:[%s4223_s9 + $0x38] sm:$0xff] }
 0xbba   : > { %1735 = vadd.xlane.f32.xlu1 %v1734_v58  ;;  %v3034_v58 = vld [vmem:[%s4223_s9 + $0x30] sm:$0xff] }
 0xbca   : > { %1742 = vrot.lane.b32.xlu2 %v1695_v3, %s4258_s26 }
 0xc1d   : > { %v1800_v37 = vpop.xlane.xlu2 %1799 }
 0xc1e   : > { %3251 = vrcp.f32 %v1800_v37 }
 0xc24   : > { %v3252_v42 = vpop.eup %3251 }
 0xc25   : > { %v1803_v39 = vpop.xlane.xlu1 %1802  ;;  %v1733_v41 = vpop.xlane.xlu2 %1732  ;;  %v1806_v59 = vmul.f32 %v3252_v42, %v3244_v27 }
 0xc26   : > { %3253 = vrcp.f32 %v1803_v39 }
 0xc27   : > { %3255 = vrcp.f32 %v1733_v41 }
 0xc2c   : > { %v3254_v43 = vpop.eup %3253 }
 0xc2d   : > { %v1807_v44 = vmul.f32 %v3254_v43, %v3248_v24  ;;  %v1743_v45 = vpop.permute.xlu2 %1742  ;;  %v1736_v46 = vpop.xlane.xlu1 %1735 }
 0xc2e   : > { %3257 = vrcp.f32 %v1736_v46  ;;  %1755 = vmatpush.bf16.msrb.mxu2 %v1743_v45  ;;  %v3256_v38 = vpop.eup %3255 }
 0xc2f   : > { %v1808_v47 = vpack.c.bf16 %v1807_v44, %v1806_v59  ;;  %v1739_v51 = vmul.f32 %v3256_v38, %v3246_v32 }
 0xc31   : > { %2763 = vmatmul.msk.bf16.vlgmr.msrb.gmra.mxu0 %vm1080_vm4, %v1808_v47 }
 0xc32   : > { %1975 = vmatpush.bf16.msra.mxu2 %v3039_v6  ;;  %v3060_v6 = vld [vmem:[%s4224_s10 + $0x160] sm:$0xff] }
 0xc34   : > { %v3258_v50 = vpop.eup %3257 }
 0xc35   : > { %v1740_v40 = vmul.f32 %v3258_v50, %v3250_v35  ;;  %v3036_v35 = vld [vmem:[%s4223_s9 + $0x40] sm:$0xff] }
 0xc36   : > { %1976 = vmatpush.bf16.msra.mxu2 %v3038_v10  ;;  %v3050_v10 = vld [vmem:[%s4224_s10 + $0x110] sm:$0xff] }
 0xc37   : > { %v1741_v52 = vpack.c.bf16 %v1740_v40, %v1739_v51 }
 0xc39   : > { %2761 = vmatmul.msk.bf16.vlgmr.msrb.gmra.mxu2 %vm1080_vm4, %v1741_v52 }
 0xc3a   : > { %1977 = vmatpush.bf16.msra.mxu2 %v3037_v13  ;;  %v3049_v13 = vld [vmem:[%s4224_s10 + $0x108] sm:$0xff] }
 0xc3e   : > { %1978 = vmatpush.bf16.msra.mxu2 %v3036_v35 }
 0xc42   : > { %1979 = vmatpush.bf16.msra.mxu2 %v3035_v36 }
 0xc46   : > { %1980 = vmatpush.bf16.msra.mxu2 %v3034_v58 }
 0xcae   : > { %v1824_v54 = vpop.f32.mrf.mxu0 }
 0xcb6   : > { %v1826_v3 = vpop.f32.mrf.mxu0 }
 0xcb7   : > { %v3175_v55 = vpack.i.bf16 %v1826_v3, %v1824_v54  ;;  %v3055_v54 = vld [vmem:[%s4224_s10 + $0x138] sm:$0xff]  ;;  %v3054_v3 = vld [vmem:[%s4224_s10 + $0x130] sm:$0xff] }
 0xcb8   : > { %2238 = vmatpush.bf16.msra.mxu0 %v3055_v54 }
 0xcb9   : > { %3176 = vrot.lane.b32.xlu1 %v3175_v55, %s4265_s27  ;;  %v3047_v55 = vld [vmem:[%s4224_s10 + $0xf8] sm:$0xff] }
 0xcba   : > { %2224 = vmatpush.bf16.msra.mxu3 %v3047_v55 }
 0xcbc   : > { %v1757_v60 = vpop.f32.mrf.mxu2  ;;  %2239 = vmatpush.bf16.msra.mxu0 %v3054_v3 }
 0xcc4   : > { %v1759_v63 = vpop.f32.mrf.mxu2 }
 0xd2b   : > { %v3177_v57 = vpop.permute.xlu1 %3176 }
 0xd2c   : > { %v3179_v61 = vunpack.i.h.bf16 %v3177_v57  ;;  %v3178_v62 = vunpack.i.l.bf16 %v3177_v57  ;;  %v3046_v57 = vld [vmem:[%s4224_s10 + $0xf0] sm:$0xff] }
 0xd2d   : > { %2225 = vmatpush.bf16.msra.mxu3 %v3046_v57 }
 0xd2e   : > { %v1838_v0 = vsel %vm1080_vm4, %v1759_v63, %v3179_v61  ;;  %v1837_v1 = vsel %vm1080_vm4, %v1757_v60, %v3178_v62  ;;  %v3053_v60 = vld [vmem:[%s4224_s10 + $0x128] sm:$0xff]  ;;  %v3062_v61 = vld [vmem:[%s4224_s10 + $0x170] sm:$0xff]  ;;  %v3052_v62 = vld [vmem:[%s4224_s10 + $0x120] sm:$0xff] }
 0xd2f   : > { %v1839_v2 = vpack.c.bf16 %v1838_v0, %v1837_v1  ;;  %2240 = vmatpush.bf16.msra.mxu0 %v3053_v60  ;;  %2253 = vmatpush.bf16.msrb.mxu1 %v3062_v61  ;;  %v3045_v63 = vld [vmem:[%s4224_s10 + $0xe8] sm:$0xff]  ;;  %v1933_v1 = vperm.slane %v3970_v5, 4 }
 0xd30   : > { %v3061_v0 = vld [vmem:[%s4224_s10 + $0x168] sm:$0xff] }
 0xd31   : > { %2776 = vmatmul.msk.bf16.vlgmr.msra.gmra.mxu1 %vm591_vm2, %v1839_v2  ;;  %2226 = vmatpush.bf16.msra.mxu3 %v3045_v63  ;;  %v3051_v2 = vld [vmem:[%s4224_s10 + $0x118] sm:$0xff] }
 0xd33   : > { %2241 = vmatpush.bf16.msra.mxu0 %v3052_v62  ;;  %2254 = vmatpush.bf16.msrb.mxu1 %v3061_v0 }
 0xd37   : > { %2242 = vmatpush.bf16.msra.mxu0 %v3051_v2  ;;  %2255 = vmatpush.bf16.msrb.mxu1 %v3060_v6  ;;  %v2079_v6 = vperm.slane %v3970_v5, 5 }
 0xd3b   : > { %2243 = vmatpush.bf16.msra.mxu0 %v3050_v10 }
 0xd3f   : > { %2244 = vmatpush.bf16.msra.mxu0 %v3049_v13 }
 0xdae   : > { %v1870_v8 = vpop.f32.mrf.mxu1 }
 0xdaf   : > { %v1871_v9 = vadd.f32 %v1870_v8, %v1845_v4 }
 0xdb1   : > { %v1875_v11 = vadd.f32 %v1871_v9, %v3959_v48 }
 0xdb3   : > { %v1877_v12 = vmul.f32 %v3553_v19, %v1875_v11  ;;  %v3043_v11 = vld [vmem:[%s4224_s10 + $0xd8] sm:$0xff] }
 0xdb5   : > { %v1880_v17 = vmul.f32 %v1879_v23, %v1877_v12  ;;  %v3059_v12 = vld [vmem:[%s4224_s10 + $0x158] sm:$0xff] }
 0xdb6   : > { %v1872_v14 = vpop.f32.mrf.mxu1  ;;  %2256 = vmatpush.bf16.msrb.mxu1 %v3059_v12 }
 0xdb7   : > { %v1873_v22 = vadd.f32 %v1872_v14, %v1845_v4  ;;  %v1883_v7 = vadd.f32 %v1882_v18, %v1880_v17  ;;  %v3044_v4 = vld [vmem:[%s4224_s10 + $0xe0] sm:$0xff]  ;;  %v3042_v14 = vld [vmem:[%s4224_s10 + $0xd0] sm:$0xff] }
 0xdb8   : > { %2227 = vmatpush.bf16.msra.mxu3 %v3044_v4  ;;  %v3058_v17 = vld [vmem:[%s4224_s10 + $0x150] sm:$0xff]  ;;  %v3065_v4 = vld [vmem:[%s4226_s12 + $0x8] sm:$0xff] }
 0xdb9   : > { %v1876_v25 = vadd.f32 %v1873_v22, %v3962_v49  ;;  %v4023_v27 = vmul.f32 %v3553_v19, %v1883_v7  ;;  %v3041_v7 = vld [vmem:[%s4224_s10 + $0xc8] sm:$0xff]  ;;  %2334 = vmatpush.bf16.msrb.mxu2 %v3065_v4 }
 0xdba   : > { %2257 = vmatpush.bf16.msrb.mxu1 %v3058_v17  ;;  %v2273_v17 = vperm.slane %v3970_v5, 7 }
 0xdbb   : > { %v1878_v48 = vmul.f32 %v3556_v20, %v1876_v25  ;;  %v1906_v30 = vrot.slane %v4023_v27, 1  ;;  %v1900_v41 = vrot.slane %v4023_v27, 7  ;;  %v3048_v25 = vld [vmem:[%s4224_s10 + $0x100] sm:$0xff] }
 0xdbc   : > { %2228 = vmatpush.bf16.msra.mxu3 %v3043_v11  ;;  %2245 = vmatpush.bf16.msra.mxu0 %v3048_v25 }
 0xdbd   : > { %v1881_v16 = vmul.f32 %v1879_v23, %v1878_v48  ;;  %v3057_v48 = vld [vmem:[%s4224_s10 + $0x148] sm:$0xff] }
 0xdbe   : > { %2258 = vmatpush.bf16.msrb.mxu1 %v3057_v48 }
 0xdbf   : > { %v1884_v21 = vadd.f32 %v1882_v18, %v1881_v16 }
 0xdc0   : > { %2229 = vmatpush.bf16.msra.mxu3 %v3042_v14 }
 0xdc1   : > { %v4026_v28 = vmul.f32 %v3556_v20, %v1884_v21 }
 0xdc3   : > { %v3180_v29 = vpack.i.bf16 %v4026_v28, %v4023_v27  ;;  %v1907_v32 = vrot.slane %v4026_v28, 1  ;;  %v1901_v39 = vrot.slane %v4026_v28, 7 }
 0xdc4   : > { %2230 = vmatpush.bf16.msra.mxu3 %v3041_v7 }
 0xdc5   : > { %3181 = vrot.lane.b32.xlu0 %v3180_v29, %s4260_s2  ;;  %v1909_v49 = vsel %vm648_vm9, %v1907_v32, %v1906_v30  ;;  %v1908_v33 = vsel %vm648_vm9, %v1906_v30, %v1907_v32  ;;  %v1903_v42 = vsel %vm641_vm10, %v1901_v39, %v1900_v41  ;;  %v1902_v46 = vsel %vm641_vm10, %v1900_v41, %v1901_v39  ;;  %v3040_v32 = vld [vmem:[%s4224_s10 + $0xc0] sm:$0xff]  ;;  %s3314_s2 = scalar_lea.hbm %s3313_s16, 16 }
 0xdc6   : > { %v1911_v24 = vmul.f32 %v3571_v26, %v1909_v49  ;;  %v1904_v44 = vmul.f32 %v3580_v31, %v1903_v42  ;;  %v3056_v49 = vld [vmem:[%s4224_s10 + $0x140] sm:$0xff]  ;;  %p3315_p0 = scmp.ne.s32.totalorder %s3313_s16, %s3314_s2  ;;  %p3320_p4 = scmp.lt.s32.totalorder %s3318_s1, %s3314_s2 }
 0xdc7   : > { %2259 = vmatpush.bf16.msrb.mxu1 %v3056_v49 }
 0xdc8   : > { %v3185_v34 = vpack.i.bf16 %v1911_v24, %v1908_v33  ;;  %2231 = vmatpush.bf16.msra.mxu3 %v3040_v32  ;;  %p3316_p1 = pnand %p3315_p0, %p3500_p5  ;;  %p3321_p7 = por %p3320_p4, %p3319_p3 }
 0xdca   : > { %p3317_p2 = pneg %p3316_p1 }
 0xdcc   : > { %p3322_p8 = pnand %p3321_p7, %p3317_p2 }
 0xdcd   : > { %3186 = vrot.lane.b32.xlu0 %v3185_v34, %s4258_s26  ;;  %s501_s26 = sand.u32 1, %s3356_s21  }
 0xdce   : > { %s2478_s30 = sshll.u32 %s501_s26, 4  ;;  %s2350_s27 = scalar_lea.sflag [#allocation4], %s501_s26 }
 0xdcf   : > { %s4162_s4 = scalar_lea.vmem [#allocation6], %s2478_s30 }
 0xdd0   : > { %s2367_s28 = sshll.u32 %s4162_s4, 4  ;;  %s2368_s28 = int_to_ptr.vmem [resolvable:$true] %s2367_s28 }
 0xe37   : > { %v3182_v37 = vpop.permute.xlu0 %3181 }
 0xe38   : > { %v3184_v43 = vunpack.i.h.bf16 %v3182_v37  ;;  %v3183_v59 = vunpack.i.l.bf16 %v3182_v37 }
 0xe3a   : > { %v1928_v50 = vsel %vm591_vm2, %v1904_v44, %v3183_v59  ;;  %v1929_v51 = vsel %vm591_vm2, %v1902_v46, %v3184_v43 }
 0xe3f   : > { %v3187_v45 = vpop.permute.xlu0 %3186 }
 0xe40   : > { %v3189_v47 = vunpack.i.h.bf16 %v3187_v45  ;;  %v3188_v38 = vunpack.i.l.bf16 %v3187_v45 }
 0xe42   : > { %v1930_v40 = vsel %vm686_vm13, %v1928_v50, %v3188_v38  ;;  %v1931_v52 = vsel %vm686_vm13, %v1929_v51, %v3189_v47 }
 0xe43   : > { %v1932_v53 = vpack.c.bf16 %v1931_v52, %v1930_v40 }
 0xe45   : > { %2813 = vmatmul.msk.bf16.vlgmr.msra.gmra.mxu2 %vm689_vm14, %v1932_v53 }
 0xec8   : > { %v1982_v8 = vpop.f32.mrf.mxu2 }
 0xec9   : > { %v1983_v9 = vadd.f32 %v1982_v8, %v1933_v1 }
 0xecb   : > { %v1987_v23 = vmul.f32 1.442695, %v1983_v9 }
 0xecd   : > { %3259 = vpow2.f32 %v1987_v23  ;;  %v2270_v23 = vperm.slane %v3970_v5, 6 }
 0xed0   : > { %v1984_v18 = vpop.f32.mrf.mxu2 }
 0xed1   : > { %v1985_v22 = vadd.f32 %v1984_v18, %v1933_v1 }
 0xed3   : > { %v3260_v16 = vpop.eup %3259  ;;  %v1989_v21 = vmul.f32 1.442695, %v1985_v22 }
 0xed4   : > { %v1991_v29 = vadd.f32 1.0, %v3260_v16  ;;  %v1994_v30 = vmul.f32 -0.5, %v3260_v16  ;;  %v1997_v33 = vand.u32 2147483647, %v3260_v16 }
 0xed5   : > { %3261 = vpow2.f32 %v1989_v21 }
 0xed6   : > { %3263 = vlog2.f32 %v1991_v29  ;;  %v1995_v24 = vadd.f32 1.0, %v1994_v30  ;;  %vm1998_vm8 = vcmp.lt.f32.partialorder %v1997_v33, 0.0004427343 }
 0xed8   : > { %v1996_v37 = vmul.f32 %v3260_v16, %v1995_v24 }
 0xedb   : > { %v3262_v34 = vpop.eup %3261 }
 0xedc   : > { %v3264_v35 = vpop.eup %3263  ;;  %v2000_v36 = vadd.f32 1.0, %v3262_v34  ;;  %v2003_v39 = vmul.f32 -0.5, %v3262_v34  ;;  %v2006_v43 = vand.u32 2147483647, %v3262_v34 }
 0xedd   : > { %v1993_v58 = vmul.f32 0.6931472, %v3264_v35 }
 0xede   : > { %3265 = vlog2.f32 %v2000_v36  ;;  %v2004_v42 = vadd.f32 1.0, %v2003_v39  ;;  %vm2007_vm11 = vcmp.lt.f32.partialorder %v2006_v43, 0.0004427343 }
 0xedf   : > { %v1999_v41 = vsel %vm1998_vm8, %v1996_v37, %v1993_v58 }
 0xee0   : > { %3267 = vtanh.f32 %v1999_v41  ;;  %v2005_v45 = vmul.f32 %v3262_v34, %v2004_v42 }
 0xee4   : > { %v3266_v59 = vpop.eup %3265 }
 0xee5   : > { %v2002_v44 = vmul.f32 0.6931472, %v3266_v59 }
 0xee6   : > { %v3268_v46 = vpop.eup %3267 }
 0xee7   : > { %v2008_v47 = vsel %vm2007_vm11, %v2005_v45, %v2002_v44  ;;  %v2011_v38 = vmul.f32 %v3268_v46, %v1983_v9 }
 0xee8   : > { %3269 = vtanh.f32 %v2008_v47 }
 0xee9   : > { %v2013_v51 = vmul.f32 %v3553_v19, %v2011_v38 }
 0xeeb   : > { %v2064_v53 = vrot.slane %v2013_v51, 7  ;;  %v2070_v54 = vrot.slane %v2013_v51, 1 }
 0xeee   : > { %v3270_v50 = vpop.eup %3269 }
 0xeef   : > { %v2012_v40 = vmul.f32 %v3270_v50, %v1985_v22 }
 0xef1   : > { %v2014_v52 = vmul.f32 %v3556_v20, %v2012_v40 }
 0xef3   : > { %v2065_v3 = vrot.slane %v2014_v52, 7  ;;  %v2071_v55 = vrot.slane %v2014_v52, 1  ;;  %v2077_v56 = vpack.c.bf16 %v2014_v52, %v2013_v51 }
 0xef5   : > { %2246 = vmatmul.bf16.vlgmr.msra.gmra.mxu0 %v2077_v56  ;;  %v2067_v60 = vsel %vm641_vm10, %v2065_v3, %v2064_v53  ;;  %v2073_v57 = vsel %vm648_vm9, %v2071_v55, %v2070_v54  ;;  %v2066_v63 = vsel %vm641_vm10, %v2064_v53, %v2065_v3  ;;  %v2072_v0 = vsel %vm648_vm9, %v2070_v54, %v2071_v55 }
 0xef6   : > { %v2068_v61 = vmul.f32 %v3580_v31, %v2067_v60  ;;  %v2075_v62 = vmul.f32 %v3571_v26, %v2073_v57  ;;  %v3064_v26 = vld [vmem:[%s4226_s12] sm:$0xff] }
 0xef7   : > { %2335 = vmatpush.bf16.msrb.mxu2 %v3064_v26 }
 0xef8   : > { %v2076_v1 = vpack.c.bf16 %v2066_v63, %v2068_v61  ;;  %v2078_v2 = vpack.c.bf16 %v2075_v62, %v2072_v0 }
 0xefa   : > { %2232 = vmatmul.bf16.vlgmr.msra.gmra.mxu3 %v2076_v1  ;;  %2260 = vmatmul.bf16.vlgmr.msrb.gmra.mxu1 %v2078_v2 }
 0xf72   : > { %v2247_v31 = vpop.f32.mrf.mxu0 }
 0xf77   : > { %v2261_v9 = vpop.f32.mrf.mxu1 }
 0xf7a   : > { %v2249_v22 = vpop.f32.mrf.mxu0 }
 0xf7d   : > { %v2233_v8 = vpop.f32.mrf.mxu3 }
 0xf7e   : > { %v2234_v15 = vadd.f32 %v2233_v8, %v2079_v6 }
 0xf7f   : > { %v2263_v48 = vpop.f32.mrf.mxu1 }
 0xf80   : > { %v2248_v10 = vadd.f32 %v2247_v31, %v2234_v15 }
 0xf82   : > { %v2262_v11 = vadd.f32 %v2261_v9, %v2248_v10 }
 0xf84   : > { %v2266_v12 = vadd.f32 %v2262_v11, %v4023_v27 }
 0xf85   : > { %v2235_v13 = vpop.f32.mrf.mxu3 }
 0xf86   : > { %v2268_v14 = vmul.f32 %v3553_v19, %v2266_v12  ;;  %v2236_v18 = vadd.f32 %v2235_v13, %v2079_v6 }
 0xf88   : > { %v2271_v25 = vmul.f32 %v2270_v23, %v2268_v14  ;;  %v2250_v7 = vadd.f32 %v2249_v22, %v2236_v18 }
 0xf8a   : > { %v2274_v16 = vadd.f32 %v2273_v17, %v2271_v25  ;;  %v2264_v21 = vadd.f32 %v2263_v48, %v2250_v7 }
 0xf8c   : > { %v2276_v29 = vmul.f32 %v3553_v19, %v2274_v16  ;;  %v2267_v27 = vadd.f32 %v2264_v21, %v4026_v28 }
 0xf8e   : > { %v2278_v30 = vmul.f32 1.442695, %v2276_v29  ;;  %v2269_v32 = vmul.f32 %v3556_v20, %v2267_v27  ;;  %2347 = vst.msk [vmem:[%s4162_s4] sm:$0xff] %vm591_vm2, %v2276_v29 }
 0xf90   : > { %3271 = vpow2.f32 %v2278_v30  ;;  %v2272_v5 = vmul.f32 %v2270_v23, %v2269_v32 }
 0xf92   : > { %v2275_v49 = vadd.f32 %v2273_v17, %v2272_v5 }
 0xf94   : > { %v2277_v24 = vmul.f32 %v3556_v20, %v2275_v49 }
 0xf96   : > { %v3272_v33 = vpop.eup %3271  ;;  %v2280_v34 = vmul.f32 1.442695, %v2277_v24  ;;  %2348 = vst.msk [vmem:[%s4162_s4 + $0x8] sm:$0xff] %vm591_vm2, %v2277_v24 }
 0xf97   : > { %v2282_v35 = vadd.f32 1.0, %v3272_v33  ;;  %v2285_v28 = vmul.f32 -0.5, %v3272_v33  ;;  %v2288_v42 = vand.u32 2147483647, %v3272_v33 }
 0xf98   : > { %3273 = vpow2.f32 %v2280_v34 }
 0xf99   : > { %3275 = vlog2.f32 %v2282_v35  ;;  %v2286_v39 = vadd.f32 1.0, %v2285_v28  ;;  %vm2289_vm9 = vcmp.lt.f32.partialorder %v2288_v42, 0.0004427343 }
 0xf9b   : > { %v2287_v59 = vmul.f32 %v3272_v33, %v2286_v39 }
 0xf9e   : > { %v3274_v36 = vpop.eup %3273 }
 0xf9f   : > { %v3276_v58 = vpop.eup %3275  ;;  %v2291_v37 = vadd.f32 1.0, %v3274_v36  ;;  %v2294_v41 = vmul.f32 -0.5, %v3274_v36  ;;  %v2297_v45 = vand.u32 2147483647, %v3274_v36 }
 0xfa0   : > { %v2284_v43 = vmul.f32 0.6931472, %v3276_v58 }
 0xfa1   : > { %3277 = vlog2.f32 %v2291_v37  ;;  %v2295_v44 = vadd.f32 1.0, %v2294_v41  ;;  %vm2298_vm10 = vcmp.lt.f32.partialorder %v2297_v45, 0.0004427343 }
 0xfa2   : > { %v2290_v46 = vsel %vm2289_vm9, %v2287_v59, %v2284_v43 }
 0xfa3   : > { %v2296_v50 = vmul.f32 %v3274_v36, %v2295_v44  ;;  %3279 = vtanh.f32 %v2290_v46 }
 0xfa7   : > { %v3278_v47 = vpop.eup %3277 }
 0xfa8   : > { %v2293_v38 = vmul.f32 0.6931472, %v3278_v47 }
 0xfa9   : > { %v3280_v40 = vpop.eup %3279 }
 0xfaa   : > { %v2299_v51 = vsel %vm2298_vm10, %v2296_v50, %v2293_v38  ;;  %v2302_v53 = vmul.f32 %v3280_v40, %v2276_v29 }
 0xfab   : > { %3281 = vtanh.f32 %v2299_v51 }
 0xfb1   : > { %v3282_v52 = vpop.eup %3281 }
 0xfb2   : > { %v2303_v54 = vmul.f32 %v3282_v52, %v2277_v24 }
 0xfb4   : > { %v2304_v3 = vpack.c.bf16 %v2303_v54, %v2302_v53 }
 0xfb6   : > { %2966 = vmatmul.msk.bf16.vlgmr.msrb.gmra.mxu2 %vm591_vm2, %v2304_v3 }
 0xfb7   : > { %3325 = shalt.err (!%p3322_p8)
}
 0xfb8   : > { %s3377_s26 = smov 128   ;;  %s3378_s4 = smov 8   ;;  %v3190_v55 = vld [vmem:[%s4227_s13] ss:$0 sm:$0xff]  ;;  %vm2344_vm2 = vcmask 162816  }
 0xfb9   : > { %3071 = dma.vmem_to_hbm [thread:$0]  (%p3500_p5), %s2368_s28, 256, %s2370_s22, %s2350_s27, %s3377_s26, %s3377_s26, %s3378_s4  }
 0xfba   : > { %s4266_s18 = sshll.u32 %s3516_s24, 4 }
 0xfbb   : > { %s520_s16 = scalar_lea.vmem %s4229_s15, %s4266_s18 }
0x1039   : > { %v2337_v56 = vpop.f32.mrf.mxu2 }
0x103a   : > { %v2338_v60 = vadd.f32 %v3190_v55, %v2337_v56 }
0x103c   : > { %v2342_v57 = vmul.f32 %v3553_v19, %v2338_v60 }
0x103e   : > { %2345 = vst.msk [vmem:[%s520_s16] sm:$0xff] %vm2344_vm2, %v2342_v57 }
0x1041   : > { %v2339_v61 = vpop.f32.mrf.mxu2 }
0x1042   : > { %v2340_v62 = vadd.f32 %v3190_v55, %v2339_v61 }
0x1044   : > { %v2343_v63 = vmul.f32 %v3556_v20, %v2340_v62 }
0x1046   : > { %2346 = vst.msk [vmem:[%s520_s16 + $0x8] sm:$0xff] %vm2344_vm2, %v2343_v63 }
0x1047 PF: > { %p3083_p5 = scmp.ge.s32.totalorder %s3364_s23, 2  ;;  %s2387_s28 = sand.u32 1, %s3352_s20  }
0x1048   : > { %s2388_s24 = scalar_lea.sflag [#allocation4], %s2387_s28 }
0x1049   : > { %p3078_p9 = pnand %p3083_p5, %p3504_p6 }
0x104b   : > { %p3079_p10 = pneg %p3078_p9 }
0x104d   : > { %3347 = dma.done.wait (%p3079_p10), %s2388_s24, 256  }
0x104e   : > { %3349 = vsyncadd (%p3079_p10), %s2388_s24, 4294967040  ;;  %s4268_s23 = sld [smem:[#allocation10_spill]]  ;;  %s4271_s20 = smov %s3356_s21 }
0x104f   : > { %s4269_s22 = sld [smem:[#allocation9_spill]] }
0x1050   : > { %s4270_s27 = sld [smem:[#allocation11_spill]] }
0x1054   : > { %p28_p11 = scmp.ge.s32.totalorder %s4268_s23, 4  }
0x1055   : > { %s4272_s21 = smov %s4269_s22 }
0x1056   : > { %s4273_s22 = smov %s4270_s27  ;;  %30 = sbr.rel (!%p28_p11) target bundleno = 10 (0xa), region = 135 }
0x105b   :  { %2402 = vsyncpa [#allocation4], 1 }
0x105c   :  { %2404 = vsyncpa [#allocation4 + $0x1], 1 }
0x105d   :  { %2405 = vsyncpa [#allocation5], 1 }
0x105e   :  { %2407 = vsyncpa [#allocation5 + $0x1], 1 }

</bundles_post_ra>
